<compile_context>
chip_gen: v7x
topology: tpu7x:2x2x1
jax: 0.10.0
libtpu: 0.0.40
codegen_flags: <defaults>
</compile_context>

<pallas_src>
import functools

import jax
import jax.numpy as jnp
from jax import lax
from jax.experimental import pallas as pl
from jax.experimental.pallas import tpu as pltpu

LN_EPS = 1e-5
BN_EPS = 1e-5


# ------------------------------ fused kernel ---------------------------------

def _fused_residual_kernel(xv_ref, w_ref, aux_ref, o_ref, *, hh_tile, wh):
    # xv_ref : (Cin, hh_tile, 2*Wh) uint32 -- each lane packs the two bf16
    #          values of one horizontal pool pair; within a row the first Wh
    #          lanes are the even input row (dh=0), the next Wh the odd row.
    # w_ref  : (C, Cin) bf16 -- 1x1 conv weight with eval-mode BN scale folded.
    # aux_ref: (3, C, Wh) f32 -- [conv-bias+BN-shift, LN gamma, LN beta],
    #          pre-broadcast over the lane axis (one DMA for all three).
    # o_ref  : (C, hh_tile, Wh) f32 -- pooled + LayerNormed NCHW map.
    w = w_ref[...]
    bias = aux_ref[0]
    ln_g = aux_ref[1]
    ln_b = aux_ref[2]

    xp = xv_ref[...]                                            # uint32
    # Unpack the two horizontal taps of every pool pair (pure VPU bit ops:
    # a bf16 value is exactly the top 16 bits of its f32 representation).
    lo = pltpu.bitcast(xp << 16, jnp.float32).astype(jnp.bfloat16)
    hi = pltpu.bitcast(xp & jnp.uint32(0xFFFF0000), jnp.float32).astype(jnp.bfloat16)

    for r in range(hh_tile):                                    # static unroll
        # 1x1 conv on one pooled row (both vertical taps at once): lane-dense
        # MXU matmuls (C, Cin) x (Cin, 2*Wh) with f32 accumulation.
        y0 = jnp.dot(w, lo[:, r, :], preferred_element_type=jnp.float32)
        y1 = jnp.dot(w, hi[:, r, :], preferred_element_type=jnp.float32)
        # 2x2 max-pool == elementwise max of four aligned Wh-wide lane slabs.
        m = jnp.maximum(jnp.maximum(y0[:, :wh], y0[:, wh:]),
                        jnp.maximum(y1[:, :wh], y1[:, wh:]))
        m = m + bias                     # identical per-channel shift for all taps
        # LayerNorm over channels (the small C axis); spatial stays on lanes.
        mu = jnp.mean(m, axis=0, keepdims=True)
        var = jnp.mean((m - mu) ** 2, axis=0, keepdims=True)
        yn = (m - mu) * lax.rsqrt(var + LN_EPS)
        o_ref[:, r, :] = yn * ln_g + ln_b


# ------------------------------ tiling helper ---------------------------------

def _pick_hh_tile(B, Hh, Wh, Cin, C):
    """Pooled rows per grid step.

    tile == Hh or tile % 8 == 0 (sublane-aligned blocks), tile divides Hh,
    double-buffered block <= ~8 MiB (v7x-safe), <= 64 unrolled rows, and keep
    >= 2 parallel grid steps when possible so both v7x TensorCores get work.
    """
    cands = [t for t in range(1, Hh + 1)
             if Hh % t == 0 and (t == Hh or t % 8 == 0)]

    def blk_bytes(t):           # double-buffered input + output block
        return 2 * (Cin * t * 2 * Wh * 4 + C * t * Wh * 4)

    ok = [t for t in cands if blk_bytes(t) <= (8 << 20) and t <= 64] or [min(cands)]
    t = max(ok)
    if B * (Hh // t) < 2:
        split = [c for c in ok if Hh // c >= 2]
        if split:
            t = max(split)
    return t


# --------------------------------- forward -----------------------------------

def multires_block_1(x_nchw, params):
    """Forward of MultiResBlock_1.  x_nchw: (B, in_ch, H, W) -> (B, (H//2)*(W//2), W_ch)."""
    B, Cin, H, W = x_nchw.shape
    C = params['ln_g'].shape[-1]
    assert H % 2 == 0 and W % 2 == 0, "even spatial dims expected (MaxPool2d(2,2))"
    Hh, Wh = H // 2, W // 2

    # Fold eval-mode BatchNorm into the 1x1 conv (no activation on this path).
    g = params['bn_gamma'] * lax.rsqrt(params['bn_var'] + BN_EPS)
    s = params['bn_beta'] - params['bn_mean'] * g
    w_fold = (params['res_w'] * g[None, :]).T.astype(jnp.bfloat16)          # (C, Cin)
    bias = params['res_b'] * g + s                                          # (C,)

    # Stage the activation in bf16 and pack each horizontal pool pair into one
    # uint32 lane (layout-preserving bitcast; in a real model x is already
    # bf16 so this fuses with the producer -- no extra HBM pass of the input).
    xb = x_nchw.astype(jnp.bfloat16)
    xp = lax.bitcast_convert_type(xb.reshape(B, Cin, H, Wh, 2), jnp.uint32)  # (B,Cin,H,Wh)
    # Merge each vertical row pair into one lane row: [dh=0 pairs | dh=1 pairs].
    xv = xp.reshape(B, Cin, Hh, 2 * Wh)                                      # free reshape

    # Single packed aux input: bias / LN gamma / LN beta, broadcast over lanes.
    aux = jnp.stack([
        jnp.broadcast_to(bias[:, None], (C, Wh)),
        jnp.broadcast_to(params['ln_g'][:, None], (C, Wh)),
        jnp.broadcast_to(params['ln_b'][:, None], (C, Wh)),
    ]).astype(jnp.float32)                                                   # (3, C, Wh)

    hh_tile = _pick_hh_tile(B, Hh, Wh, Cin, C)
    n_row_tiles = Hh // hh_tile
    blk_bytes = 2 * (Cin * hh_tile * 2 * Wh * 4 + C * hh_tile * Wh * 4)

    kern = functools.partial(_fused_residual_kernel, hh_tile=hh_tile, wh=Wh)
    out = pl.pallas_call(
        kern,
        out_shape=jax.ShapeDtypeStruct((B, C, Hh, Wh), jnp.float32),
        grid=(B, n_row_tiles),
        in_specs=[
            pl.BlockSpec((None, Cin, hh_tile, 2 * Wh), lambda b, i: (b, 0, i, 0)),
            pl.BlockSpec((C, Cin), lambda b, i: (0, 0)),
            pl.BlockSpec((3, C, Wh), lambda b, i: (0, 0, 0)),
        ],
        out_specs=pl.BlockSpec((None, C, hh_tile, Wh), lambda b, i: (b, 0, i, 0)),
        compiler_params=pltpu.CompilerParams(
            dimension_semantics=("parallel", "parallel"),
            vmem_limit_bytes=int(min(48 << 20, max(16 << 20, 4 * blk_bytes))),
        ),
    )(xv, w_fold, aux)

    # (B, C, Hh, Wh) -> (B, Hh*Wh, C): output-side layout plumbing (tiny XLA op).
    return jnp.transpose(out.reshape(B, C, Hh * Wh), (0, 2, 1))


# ------------------------------ parameter setup -------------------------------

def init_params(key, in_ch, U, alpha=1):
    Wch = int(alpha * U)
    keys = jax.random.split(key, 8)
    p = {}
    p['res_w'] = (1.0 / jnp.sqrt(jnp.float32(in_ch))) * \
        jax.random.normal(keys[0], (in_ch, Wch), jnp.float32)
    p['res_b'] = 0.1 * jax.random.normal(keys[1], (Wch,), jnp.float32)
    p['bn_gamma'] = 1.0 + 0.1 * jax.random.normal(keys[2], (Wch,), jnp.float32)
    p['bn_beta'] = 0.1 * jax.random.normal(keys[3], (Wch,), jnp.float32)
    p['bn_mean'] = 0.1 * jax.random.normal(keys[4], (Wch,), jnp.float32)
    p['bn_var'] = 0.5 + jax.random.uniform(keys[5], (Wch,), jnp.float32)
    p['ln_g'] = 1.0 + 0.1 * jax.random.normal(keys[6], (Wch,), jnp.float32)
    p['ln_b'] = 0.1 * jax.random.normal(keys[7], (Wch,), jnp.float32)
    return p


# ------------------------------ pure-JAX reference ----------------------------

def reference(x_nchw, params):
    """Same math (eval-mode BN folded, bf16-staged conv operands, f32 elsewhere)."""
    B, Cin, H, W = x_nchw.shape
    C = params['ln_g'].shape[-1]
    g = params['bn_gamma'] * lax.rsqrt(params['bn_var'] + BN_EPS)
    s = params['bn_beta'] - params['bn_mean'] * g
    wf = (params['res_w'] * g[None, :]).astype(jnp.bfloat16).astype(jnp.float32)   # (Cin, C)
    bias = params['res_b'] * g + s

    xq = jnp.transpose(x_nchw, (0, 2, 3, 1)).astype(jnp.bfloat16).astype(jnp.float32)
    res = jnp.einsum('bhwc,cd->bhwd', xq, wf) + bias.reshape(1, 1, 1, -1)

    pooled = lax.reduce_window(res, -jnp.inf, lax.max, (1, 2, 2, 1), (1, 2, 2, 1), 'VALID')
    pooled = pooled.reshape(B, (H // 2) * (W // 2), C)

    mu = jnp.mean(pooled, axis=-1, keepdims=True)
    var = jnp.mean((pooled - mu) ** 2, axis=-1, keepdims=True)
    n = (pooled - mu) * lax.rsqrt(var + LN_EPS)
    return n * params['ln_g'].reshape(1, 1, -1) + params['ln_b'].reshape(1, 1, -1)


# ----------------------------------- main --------------------------------------

if __name__ == "__main__":
    key = jax.random.PRNGKey(0)
    kx, kp = jax.random.split(key)

    in_ch, U = 4, 8                       # channels after the block = alpha * U = 8
    B, H, W = 2, 16, 16
    x = jax.random.normal(kx, (B, in_ch, H, W), jnp.float32)   # NCHW, like PyTorch
    params = init_params(kp, in_ch, U)

    out = jax.jit(multires_block_1)(x, params)
    out = jax.block_until_ready(out)

    assert out.shape == (B, (H // 2) * (W // 2), U), out.shape

    ref = reference(x, params)
    max_err = float(jnp.max(jnp.abs(out - ref)))
    if not jnp.allclose(out, ref, atol=1e-4, rtol=1e-4):
        raise AssertionError(f"Pallas output mismatch vs reference, max abs err = {max_err}")

    print("KERNEL_OK")
</pallas_src>

<mosaic_0001>
module attributes {stable_mosaic.version = 11 : i64} {
  func.func @_fused_residual_kernel(%arg0: i32, %arg1: i32, %arg2: memref<1x4x8x16xi32, #tpu.memory_space<vmem>>, %arg3: memref<8x4xbf16, #tpu.memory_space<vmem>>, %arg4: memref<3x8x8xf32, #tpu.memory_space<vmem>>, %arg5: memref<1x8x8x8xf32, #tpu.memory_space<vmem>>) attributes {dimension_semantics = [#tpu.dimension_semantics<parallel>, #tpu.dimension_semantics<parallel>], iteration_bounds = array<i64: 2, 1>, scalar_prefetch = 0 : i64, scratch_operands = 0 : i64, tpu.core_type = #tpu.core_type<tc>, window_params = [{transform_indices = @transform_0, window_bounds = array<i64: 1, 4, 8, 16>}, {pipeline_mode = #tpu.pipeline_mode<synchronous>, transform_indices = @transform_1, window_bounds = array<i64: 8, 4>}, {pipeline_mode = #tpu.pipeline_mode<synchronous>, transform_indices = @transform_2, window_bounds = array<i64: 3, 8, 8>}, {transform_indices = @transform_3, window_bounds = array<i64: 1, 8, 8, 8>}]} {
    %c0 = arith.constant 0 : index
    %c0_0 = arith.constant 0 : index
    %0 = vector.load %arg3[%c0, %c0_0] : memref<8x4xbf16, #tpu.memory_space<vmem>>, vector<8x4xbf16>
    %c0_1 = arith.constant 0 : index
    %c0_2 = arith.constant 0 : index
    %c0_3 = arith.constant 0 : index
    %1 = vector.load %arg4[%c0_1, %c0_2, %c0_3] : memref<3x8x8xf32, #tpu.memory_space<vmem>>, vector<1x8x8xf32>
    %2 = vector.shape_cast %1 : vector<1x8x8xf32> to vector<8x8xf32>
    %c1 = arith.constant 1 : index
    %c0_4 = arith.constant 0 : index
    %c0_5 = arith.constant 0 : index
    %3 = vector.load %arg4[%c1, %c0_4, %c0_5] : memref<3x8x8xf32, #tpu.memory_space<vmem>>, vector<1x8x8xf32>
    %4 = vector.shape_cast %3 : vector<1x8x8xf32> to vector<8x8xf32>
    %c2 = arith.constant 2 : index
    %c0_6 = arith.constant 0 : index
    %c0_7 = arith.constant 0 : index
    %5 = vector.load %arg4[%c2, %c0_6, %c0_7] : memref<3x8x8xf32, #tpu.memory_space<vmem>>, vector<1x8x8xf32>
    %6 = vector.shape_cast %5 : vector<1x8x8xf32> to vector<8x8xf32>
    %c0_8 = arith.constant 0 : index
    %c0_9 = arith.constant 0 : index
    %c0_10 = arith.constant 0 : index
    %c0_11 = arith.constant 0 : index
    %7 = vector.load %arg2[%c0_8, %c0_9, %c0_10, %c0_11] : memref<1x4x8x16xi32, #tpu.memory_space<vmem>>, vector<1x4x8x16xi32>
    %8 = vector.shape_cast %7 : vector<1x4x8x16xi32> to vector<4x8x16xi32>
    %c16_i32 = arith.constant 16 : i32
    %9 = vector.broadcast %c16_i32 : i32 to vector<4x8x16xi32>
    %10 = arith.shli %8, %9 : vector<4x8x16xi32>
    %11 = tpu.bitcast %10 : vector<4x8x16xi32> -> vector<4x8x16xf32>
    %12 = arith.truncf %11 : vector<4x8x16xf32> to vector<4x8x16xbf16>
    %c-65536_i32 = arith.constant -65536 : i32
    %13 = vector.broadcast %c-65536_i32 : i32 to vector<4x8x16xi32>
    %14 = arith.andi %8, %13 : vector<4x8x16xi32>
    %15 = tpu.bitcast %14 : vector<4x8x16xi32> -> vector<4x8x16xf32>
    %16 = arith.truncf %15 : vector<4x8x16xf32> to vector<4x8x16xbf16>
    %17 = vector.extract_strided_slice %12 {offsets = [0, 0, 0], sizes = [4, 1, 16], strides = [1, 1, 1]} : vector<4x8x16xbf16> to vector<4x1x16xbf16>
    %18 = vector.shape_cast %17 : vector<4x1x16xbf16> to vector<4x16xbf16>
    %cst = arith.constant dense<0.000000e+00> : vector<8x16xf32>
    %19 = tpu.matmul %0, %18, %cst {dimension_numbers = #tpu.dot_dimension_numbers<[1], [0], [0], [1], [0, 0, 1, 1], [], []>} : vector<8x4xbf16>, vector<4x16xbf16>, vector<8x16xf32> -> vector<8x16xf32>
    %20 = vector.extract_strided_slice %16 {offsets = [0, 0, 0], sizes = [4, 1, 16], strides = [1, 1, 1]} : vector<4x8x16xbf16> to vector<4x1x16xbf16>
    %21 = vector.shape_cast %20 : vector<4x1x16xbf16> to vector<4x16xbf16>
    %cst_12 = arith.constant dense<0.000000e+00> : vector<8x16xf32>
    %22 = tpu.matmul %0, %21, %cst_12 {dimension_numbers = #tpu.dot_dimension_numbers<[1], [0], [0], [1], [0, 0, 1, 1], [], []>} : vector<8x4xbf16>, vector<4x16xbf16>, vector<8x16xf32> -> vector<8x16xf32>
    %23 = vector.extract_strided_slice %19 {offsets = [0, 0], sizes = [8, 8], strides = [1, 1]} : vector<8x16xf32> to vector<8x8xf32>
    %24 = vector.extract_strided_slice %19 {offsets = [0, 8], sizes = [8, 8], strides = [1, 1]} : vector<8x16xf32> to vector<8x8xf32>
    %25 = arith.maximumf %23, %24 : vector<8x8xf32>
    %26 = vector.extract_strided_slice %22 {offsets = [0, 0], sizes = [8, 8], strides = [1, 1]} : vector<8x16xf32> to vector<8x8xf32>
    %27 = vector.extract_strided_slice %22 {offsets = [0, 8], sizes = [8, 8], strides = [1, 1]} : vector<8x16xf32> to vector<8x8xf32>
    %28 = arith.maximumf %26, %27 : vector<8x8xf32>
    %29 = arith.maximumf %25, %28 : vector<8x8xf32>
    %30 = arith.addf %29, %2 : vector<8x8xf32>
    %cst_13 = arith.constant dense<0.000000e+00> : vector<8xf32>
    %31 = vector.multi_reduction <add>, %30, %cst_13 [0] : vector<8x8xf32> to vector<8xf32>
    %32 = vector.shape_cast %31 : vector<8xf32> to vector<1x8xf32>
    %cst_14 = arith.constant 8.000000e+00 : f32
    %33 = vector.broadcast %cst_14 : f32 to vector<1x8xf32>
    %34 = arith.divf %32, %33 : vector<1x8xf32>
    %35 = vector.broadcast %34 : vector<1x8xf32> to vector<8x8xf32>
    %36 = arith.subf %30, %35 : vector<8x8xf32>
    %37 = arith.mulf %36, %36 : vector<8x8xf32>
    %cst_15 = arith.constant dense<0.000000e+00> : vector<8xf32>
    %38 = vector.multi_reduction <add>, %37, %cst_15 [0] : vector<8x8xf32> to vector<8xf32>
    %39 = vector.shape_cast %38 : vector<8xf32> to vector<1x8xf32>
    %cst_16 = arith.constant 8.000000e+00 : f32
    %40 = vector.broadcast %cst_16 : f32 to vector<1x8xf32>
    %41 = arith.divf %39, %40 : vector<1x8xf32>
    %42 = vector.broadcast %34 : vector<1x8xf32> to vector<8x8xf32>
    %43 = arith.subf %30, %42 : vector<8x8xf32>
    %cst_17 = arith.constant 9.99999974E-6 : f32
    %44 = vector.broadcast %cst_17 : f32 to vector<1x8xf32>
    %45 = arith.addf %41, %44 : vector<1x8xf32>
    %46 = math.rsqrt %45 : vector<1x8xf32>
    %47 = vector.broadcast %46 : vector<1x8xf32> to vector<8x8xf32>
    %48 = arith.mulf %43, %47 : vector<8x8xf32>
    %49 = arith.mulf %48, %4 : vector<8x8xf32>
    %50 = arith.addf %49, %6 : vector<8x8xf32>
    %c0_18 = arith.constant 0 : index
    %c0_19 = arith.constant 0 : index
    %c0_20 = arith.constant 0 : index
    %c0_21 = arith.constant 0 : index
    %51 = vector.load %arg5[%c0_18, %c0_19, %c0_20, %c0_21] : memref<1x8x8x8xf32, #tpu.memory_space<vmem>>, vector<1x8x1x8xf32>
    %52 = vector.shape_cast %51 : vector<1x8x1x8xf32> to vector<8x8xf32>
    %53 = vector.shape_cast %50 : vector<8x8xf32> to vector<1x8x1x8xf32>
    tpu.vector_store %arg5[%c0_18, %c0_19, %c0_20, %c0_21], %53 {strides = array<i32>} : memref<1x8x8x8xf32, #tpu.memory_space<vmem>>, vector<1x8x1x8xf32>,
    %54 = vector.extract_strided_slice %12 {offsets = [0, 1, 0], sizes = [4, 1, 16], strides = [1, 1, 1]} : vector<4x8x16xbf16> to vector<4x1x16xbf16>
    %55 = vector.shape_cast %54 : vector<4x1x16xbf16> to vector<4x16xbf16>
    %cst_22 = arith.constant dense<0.000000e+00> : vector<8x16xf32>
    %56 = tpu.matmul %0, %55, %cst_22 {dimension_numbers = #tpu.dot_dimension_numbers<[1], [0], [0], [1], [0, 0, 1, 1], [], []>} : vector<8x4xbf16>, vector<4x16xbf16>, vector<8x16xf32> -> vector<8x16xf32>
    %57 = vector.extract_strided_slice %16 {offsets = [0, 1, 0], sizes = [4, 1, 16], strides = [1, 1, 1]} : vector<4x8x16xbf16> to vector<4x1x16xbf16>
    %58 = vector.shape_cast %57 : vector<4x1x16xbf16> to vector<4x16xbf16>
    %cst_23 = arith.constant dense<0.000000e+00> : vector<8x16xf32>
    %59 = tpu.matmul %0, %58, %cst_23 {dimension_numbers = #tpu.dot_dimension_numbers<[1], [0], [0], [1], [0, 0, 1, 1], [], []>} : vector<8x4xbf16>, vector<4x16xbf16>, vector<8x16xf32> -> vector<8x16xf32>
    %60 = vector.extract_strided_slice %56 {offsets = [0, 0], sizes = [8, 8], strides = [1, 1]} : vector<8x16xf32> to vector<8x8xf32>
    %61 = vector.extract_strided_slice %56 {offsets = [0, 8], sizes = [8, 8], strides = [1, 1]} : vector<8x16xf32> to vector<8x8xf32>
    %62 = arith.maximumf %60, %61 : vector<8x8xf32>
    %63 = vector.extract_strided_slice %59 {offsets = [0, 0], sizes = [8, 8], strides = [1, 1]} : vector<8x16xf32> to vector<8x8xf32>
    %64 = vector.extract_strided_slice %59 {offsets = [0, 8], sizes = [8, 8], strides = [1, 1]} : vector<8x16xf32> to vector<8x8xf32>
    %65 = arith.maximumf %63, %64 : vector<8x8xf32>
    %66 = arith.maximumf %62, %65 : vector<8x8xf32>
    %67 = arith.addf %66, %2 : vector<8x8xf32>
    %cst_24 = arith.constant dense<0.000000e+00> : vector<8xf32>
    %68 = vector.multi_reduction <add>, %67, %cst_24 [0] : vector<8x8xf32> to vector<8xf32>
    %69 = vector.shape_cast %68 : vector<8xf32> to vector<1x8xf32>
    %cst_25 = arith.constant 8.000000e+00 : f32
    %70 = vector.broadcast %cst_25 : f32 to vector<1x8xf32>
    %71 = arith.divf %69, %70 : vector<1x8xf32>
    %72 = vector.broadcast %71 : vector<1x8xf32> to vector<8x8xf32>
    %73 = arith.subf %67, %72 : vector<8x8xf32>
    %74 = arith.mulf %73, %73 : vector<8x8xf32>
    %cst_26 = arith.constant dense<0.000000e+00> : vector<8xf32>
    %75 = vector.multi_reduction <add>, %74, %cst_26 [0] : vector<8x8xf32> to vector<8xf32>
    %76 = vector.shape_cast %75 : vector<8xf32> to vector<1x8xf32>
    %cst_27 = arith.constant 8.000000e+00 : f32
    %77 = vector.broadcast %cst_27 : f32 to vector<1x8xf32>
    %78 = arith.divf %76, %77 : vector<1x8xf32>
    %79 = vector.broadcast %71 : vector<1x8xf32> to vector<8x8xf32>
    %80 = arith.subf %67, %79 : vector<8x8xf32>
    %cst_28 = arith.constant 9.99999974E-6 : f32
    %81 = vector.broadcast %cst_28 : f32 to vector<1x8xf32>
    %82 = arith.addf %78, %81 : vector<1x8xf32>
    %83 = math.rsqrt %82 : vector<1x8xf32>
    %84 = vector.broadcast %83 : vector<1x8xf32> to vector<8x8xf32>
    %85 = arith.mulf %80, %84 : vector<8x8xf32>
    %86 = arith.mulf %85, %4 : vector<8x8xf32>
    %87 = arith.addf %86, %6 : vector<8x8xf32>
    %c0_29 = arith.constant 0 : index
    %c0_30 = arith.constant 0 : index
    %c1_31 = arith.constant 1 : index
    %c0_32 = arith.constant 0 : index
    %88 = vector.load %arg5[%c0_29, %c0_30, %c1_31, %c0_32] : memref<1x8x8x8xf32, #tpu.memory_space<vmem>>, vector<1x8x1x8xf32>
    %89 = vector.shape_cast %88 : vector<1x8x1x8xf32> to vector<8x8xf32>
    %90 = vector.shape_cast %87 : vector<8x8xf32> to vector<1x8x1x8xf32>
    tpu.vector_store %arg5[%c0_29, %c0_30, %c1_31, %c0_32], %90 {strides = array<i32>} : memref<1x8x8x8xf32, #tpu.memory_space<vmem>>, vector<1x8x1x8xf32>,
    %91 = vector.extract_strided_slice %12 {offsets = [0, 2, 0], sizes = [4, 1, 16], strides = [1, 1, 1]} : vector<4x8x16xbf16> to vector<4x1x16xbf16>
    %92 = vector.shape_cast %91 : vector<4x1x16xbf16> to vector<4x16xbf16>
    %cst_33 = arith.constant dense<0.000000e+00> : vector<8x16xf32>
    %93 = tpu.matmul %0, %92, %cst_33 {dimension_numbers = #tpu.dot_dimension_numbers<[1], [0], [0], [1], [0, 0, 1, 1], [], []>} : vector<8x4xbf16>, vector<4x16xbf16>, vector<8x16xf32> -> vector<8x16xf32>
    %94 = vector.extract_strided_slice %16 {offsets = [0, 2, 0], sizes = [4, 1, 16], strides = [1, 1, 1]} : vector<4x8x16xbf16> to vector<4x1x16xbf16>
    %95 = vector.shape_cast %94 : vector<4x1x16xbf16> to vector<4x16xbf16>
    %cst_34 = arith.constant dense<0.000000e+00> : vector<8x16xf32>
    %96 = tpu.matmul %0, %95, %cst_34 {dimension_numbers = #tpu.dot_dimension_numbers<[1], [0], [0], [1], [0, 0, 1, 1], [], []>} : vector<8x4xbf16>, vector<4x16xbf16>, vector<8x16xf32> -> vector<8x16xf32>
    %97 = vector.extract_strided_slice %93 {offsets = [0, 0], sizes = [8, 8], strides = [1, 1]} : vector<8x16xf32> to vector<8x8xf32>
    %98 = vector.extract_strided_slice %93 {offsets = [0, 8], sizes = [8, 8], strides = [1, 1]} : vector<8x16xf32> to vector<8x8xf32>
    %99 = arith.maximumf %97, %98 : vector<8x8xf32>
    %100 = vector.extract_strided_slice %96 {offsets = [0, 0], sizes = [8, 8], strides = [1, 1]} : vector<8x16xf32> to vector<8x8xf32>
    %101 = vector.extract_strided_slice %96 {offsets = [0, 8], sizes = [8, 8], strides = [1, 1]} : vector<8x16xf32> to vector<8x8xf32>
    %102 = arith.maximumf %100, %101 : vector<8x8xf32>
    %103 = arith.maximumf %99, %102 : vector<8x8xf32>
    %104 = arith.addf %103, %2 : vector<8x8xf32>
    %cst_35 = arith.constant dense<0.000000e+00> : vector<8xf32>
    %105 = vector.multi_reduction <add>, %104, %cst_35 [0] : vector<8x8xf32> to vector<8xf32>
    %106 = vector.shape_cast %105 : vector<8xf32> to vector<1x8xf32>
    %cst_36 = arith.constant 8.000000e+00 : f32
    %107 = vector.broadcast %cst_36 : f32 to vector<1x8xf32>
    %108 = arith.divf %106, %107 : vector<1x8xf32>
    %109 = vector.broadcast %108 : vector<1x8xf32> to vector<8x8xf32>
    %110 = arith.subf %104, %109 : vector<8x8xf32>
    %111 = arith.mulf %110, %110 : vector<8x8xf32>
    %cst_37 = arith.constant dense<0.000000e+00> : vector<8xf32>
    %112 = vector.multi_reduction <add>, %111, %cst_37 [0] : vector<8x8xf32> to vector<8xf32>
    %113 = vector.shape_cast %112 : vector<8xf32> to vector<1x8xf32>
    %cst_38 = arith.constant 8.000000e+00 : f32
    %114 = vector.broadcast %cst_38 : f32 to vector<1x8xf32>
    %115 = arith.divf %113, %114 : vector<1x8xf32>
    %116 = vector.broadcast %108 : vector<1x8xf32> to vector<8x8xf32>
    %117 = arith.subf %104, %116 : vector<8x8xf32>
    %cst_39 = arith.constant 9.99999974E-6 : f32
    %118 = vector.broadcast %cst_39 : f32 to vector<1x8xf32>
    %119 = arith.addf %115, %118 : vector<1x8xf32>
    %120 = math.rsqrt %119 : vector<1x8xf32>
    %121 = vector.broadcast %120 : vector<1x8xf32> to vector<8x8xf32>
    %122 = arith.mulf %117, %121 : vector<8x8xf32>
    %123 = arith.mulf %122, %4 : vector<8x8xf32>
    %124 = arith.addf %123, %6 : vector<8x8xf32>
    %c0_40 = arith.constant 0 : index
    %c0_41 = arith.constant 0 : index
    %c2_42 = arith.constant 2 : index
    %c0_43 = arith.constant 0 : index
    %125 = vector.load %arg5[%c0_40, %c0_41, %c2_42, %c0_43] : memref<1x8x8x8xf32, #tpu.memory_space<vmem>>, vector<1x8x1x8xf32>
    %126 = vector.shape_cast %125 : vector<1x8x1x8xf32> to vector<8x8xf32>
    %127 = vector.shape_cast %124 : vector<8x8xf32> to vector<1x8x1x8xf32>
    tpu.vector_store %arg5[%c0_40, %c0_41, %c2_42, %c0_43], %127 {strides = array<i32>} : memref<1x8x8x8xf32, #tpu.memory_space<vmem>>, vector<1x8x1x8xf32>,
    %128 = vector.extract_strided_slice %12 {offsets = [0, 3, 0], sizes = [4, 1, 16], strides = [1, 1, 1]} : vector<4x8x16xbf16> to vector<4x1x16xbf16>
    %129 = vector.shape_cast %128 : vector<4x1x16xbf16> to vector<4x16xbf16>
    %cst_44 = arith.constant dense<0.000000e+00> : vector<8x16xf32>
    %130 = tpu.matmul %0, %129, %cst_44 {dimension_numbers = #tpu.dot_dimension_numbers<[1], [0], [0], [1], [0, 0, 1, 1], [], []>} : vector<8x4xbf16>, vector<4x16xbf16>, vector<8x16xf32> -> vector<8x16xf32>
    %131 = vector.extract_strided_slice %16 {offsets = [0, 3, 0], sizes = [4, 1, 16], strides = [1, 1, 1]} : vector<4x8x16xbf16> to vector<4x1x16xbf16>
    %132 = vector.shape_cast %131 : vector<4x1x16xbf16> to vector<4x16xbf16>
    %cst_45 = arith.constant dense<0.000000e+00> : vector<8x16xf32>
    %133 = tpu.matmul %0, %132, %cst_45 {dimension_numbers = #tpu.dot_dimension_numbers<[1], [0], [0], [1], [0, 0, 1, 1], [], []>} : vector<8x4xbf16>, vector<4x16xbf16>, vector<8x16xf32> -> vector<8x16xf32>
    %134 = vector.extract_strided_slice %130 {offsets = [0, 0], sizes = [8, 8], strides = [1, 1]} : vector<8x16xf32> to vector<8x8xf32>
    %135 = vector.extract_strided_slice %130 {offsets = [0, 8], sizes = [8, 8], strides = [1, 1]} : vector<8x16xf32> to vector<8x8xf32>
    %136 = arith.maximumf %134, %135 : vector<8x8xf32>
    %137 = vector.extract_strided_slice %133 {offsets = [0, 0], sizes = [8, 8], strides = [1, 1]} : vector<8x16xf32> to vector<8x8xf32>
    %138 = vector.extract_strided_slice %133 {offsets = [0, 8], sizes = [8, 8], strides = [1, 1]} : vector<8x16xf32> to vector<8x8xf32>
    %139 = arith.maximumf %137, %138 : vector<8x8xf32>
    %140 = arith.maximumf %136, %139 : vector<8x8xf32>
    %141 = arith.addf %140, %2 : vector<8x8xf32>
    %cst_46 = arith.constant dense<0.000000e+00> : vector<8xf32>
    %142 = vector.multi_reduction <add>, %141, %cst_46 [0] : vector<8x8xf32> to vector<8xf32>
    %143 = vector.shape_cast %142 : vector<8xf32> to vector<1x8xf32>
    %cst_47 = arith.constant 8.000000e+00 : f32
    %144 = vector.broadcast %cst_47 : f32 to vector<1x8xf32>
    %145 = arith.divf %143, %144 : vector<1x8xf32>
    %146 = vector.broadcast %145 : vector<1x8xf32> to vector<8x8xf32>
    %147 = arith.subf %141, %146 : vector<8x8xf32>
    %148 = arith.mulf %147, %147 : vector<8x8xf32>
    %cst_48 = arith.constant dense<0.000000e+00> : vector<8xf32>
    %149 = vector.multi_reduction <add>, %148, %cst_48 [0] : vector<8x8xf32> to vector<8xf32>
    %150 = vector.shape_cast %149 : vector<8xf32> to vector<1x8xf32>
    %cst_49 = arith.constant 8.000000e+00 : f32
    %151 = vector.broadcast %cst_49 : f32 to vector<1x8xf32>
    %152 = arith.divf %150, %151 : vector<1x8xf32>
    %153 = vector.broadcast %145 : vector<1x8xf32> to vector<8x8xf32>
    %154 = arith.subf %141, %153 : vector<8x8xf32>
    %cst_50 = arith.constant 9.99999974E-6 : f32
    %155 = vector.broadcast %cst_50 : f32 to vector<1x8xf32>
    %156 = arith.addf %152, %155 : vector<1x8xf32>
    %157 = math.rsqrt %156 : vector<1x8xf32>
    %158 = vector.broadcast %157 : vector<1x8xf32> to vector<8x8xf32>
    %159 = arith.mulf %154, %158 : vector<8x8xf32>
    %160 = arith.mulf %159, %4 : vector<8x8xf32>
    %161 = arith.addf %160, %6 : vector<8x8xf32>
    %c0_51 = arith.constant 0 : index
    %c0_52 = arith.constant 0 : index
    %c3 = arith.constant 3 : index
    %c0_53 = arith.constant 0 : index
    %162 = vector.load %arg5[%c0_51, %c0_52, %c3, %c0_53] : memref<1x8x8x8xf32, #tpu.memory_space<vmem>>, vector<1x8x1x8xf32>
    %163 = vector.shape_cast %162 : vector<1x8x1x8xf32> to vector<8x8xf32>
    %164 = vector.shape_cast %161 : vector<8x8xf32> to vector<1x8x1x8xf32>
    tpu.vector_store %arg5[%c0_51, %c0_52, %c3, %c0_53], %164 {strides = array<i32>} : memref<1x8x8x8xf32, #tpu.memory_space<vmem>>, vector<1x8x1x8xf32>,
    %165 = vector.extract_strided_slice %12 {offsets = [0, 4, 0], sizes = [4, 1, 16], strides = [1, 1, 1]} : vector<4x8x16xbf16> to vector<4x1x16xbf16>
    %166 = vector.shape_cast %165 : vector<4x1x16xbf16> to vector<4x16xbf16>
    %cst_54 = arith.constant dense<0.000000e+00> : vector<8x16xf32>
    %167 = tpu.matmul %0, %166, %cst_54 {dimension_numbers = #tpu.dot_dimension_numbers<[1], [0], [0], [1], [0, 0, 1, 1], [], []>} : vector<8x4xbf16>, vector<4x16xbf16>, vector<8x16xf32> -> vector<8x16xf32>
    %168 = vector.extract_strided_slice %16 {offsets = [0, 4, 0], sizes = [4, 1, 16], strides = [1, 1, 1]} : vector<4x8x16xbf16> to vector<4x1x16xbf16>
    %169 = vector.shape_cast %168 : vector<4x1x16xbf16> to vector<4x16xbf16>
    %cst_55 = arith.constant dense<0.000000e+00> : vector<8x16xf32>
    %170 = tpu.matmul %0, %169, %cst_55 {dimension_numbers = #tpu.dot_dimension_numbers<[1], [0], [0], [1], [0, 0, 1, 1], [], []>} : vector<8x4xbf16>, vector<4x16xbf16>, vector<8x16xf32> -> vector<8x16xf32>
    %171 = vector.extract_strided_slice %167 {offsets = [0, 0], sizes = [8, 8], strides = [1, 1]} : vector<8x16xf32> to vector<8x8xf32>
    %172 = vector.extract_strided_slice %167 {offsets = [0, 8], sizes = [8, 8], strides = [1, 1]} : vector<8x16xf32> to vector<8x8xf32>
    %173 = arith.maximumf %171, %172 : vector<8x8xf32>
    %174 = vector.extract_strided_slice %170 {offsets = [0, 0], sizes = [8, 8], strides = [1, 1]} : vector<8x16xf32> to vector<8x8xf32>
    %175 = vector.extract_strided_slice %170 {offsets = [0, 8], sizes = [8, 8], strides = [1, 1]} : vector<8x16xf32> to vector<8x8xf32>
    %176 = arith.maximumf %174, %175 : vector<8x8xf32>
    %177 = arith.maximumf %173, %176 : vector<8x8xf32>
    %178 = arith.addf %177, %2 : vector<8x8xf32>
    %cst_56 = arith.constant dense<0.000000e+00> : vector<8xf32>
    %179 = vector.multi_reduction <add>, %178, %cst_56 [0] : vector<8x8xf32> to vector<8xf32>
    %180 = vector.shape_cast %179 : vector<8xf32> to vector<1x8xf32>
    %cst_57 = arith.constant 8.000000e+00 : f32
    %181 = vector.broadcast %cst_57 : f32 to vector<1x8xf32>
    %182 = arith.divf %180, %181 : vector<1x8xf32>
    %183 = vector.broadcast %182 : vector<1x8xf32> to vector<8x8xf32>
    %184 = arith.subf %178, %183 : vector<8x8xf32>
    %185 = arith.mulf %184, %184 : vector<8x8xf32>
    %cst_58 = arith.constant dense<0.000000e+00> : vector<8xf32>
    %186 = vector.multi_reduction <add>, %185, %cst_58 [0] : vector<8x8xf32> to vector<8xf32>
    %187 = vector.shape_cast %186 : vector<8xf32> to vector<1x8xf32>
    %cst_59 = arith.constant 8.000000e+00 : f32
    %188 = vector.broadcast %cst_59 : f32 to vector<1x8xf32>
    %189 = arith.divf %187, %188 : vector<1x8xf32>
    %190 = vector.broadcast %182 : vector<1x8xf32> to vector<8x8xf32>
    %191 = arith.subf %178, %190 : vector<8x8xf32>
    %cst_60 = arith.constant 9.99999974E-6 : f32
    %192 = vector.broadcast %cst_60 : f32 to vector<1x8xf32>
    %193 = arith.addf %189, %192 : vector<1x8xf32>
    %194 = math.rsqrt %193 : vector<1x8xf32>
    %195 = vector.broadcast %194 : vector<1x8xf32> to vector<8x8xf32>
    %196 = arith.mulf %191, %195 : vector<8x8xf32>
    %197 = arith.mulf %196, %4 : vector<8x8xf32>
    %198 = arith.addf %197, %6 : vector<8x8xf32>
    %c0_61 = arith.constant 0 : index
    %c0_62 = arith.constant 0 : index
    %c4 = arith.constant 4 : index
    %c0_63 = arith.constant 0 : index
    %199 = vector.load %arg5[%c0_61, %c0_62, %c4, %c0_63] : memref<1x8x8x8xf32, #tpu.memory_space<vmem>>, vector<1x8x1x8xf32>
    %200 = vector.shape_cast %199 : vector<1x8x1x8xf32> to vector<8x8xf32>
    %201 = vector.shape_cast %198 : vector<8x8xf32> to vector<1x8x1x8xf32>
    tpu.vector_store %arg5[%c0_61, %c0_62, %c4, %c0_63], %201 {strides = array<i32>} : memref<1x8x8x8xf32, #tpu.memory_space<vmem>>, vector<1x8x1x8xf32>,
    %202 = vector.extract_strided_slice %12 {offsets = [0, 5, 0], sizes = [4, 1, 16], strides = [1, 1, 1]} : vector<4x8x16xbf16> to vector<4x1x16xbf16>
    %203 = vector.shape_cast %202 : vector<4x1x16xbf16> to vector<4x16xbf16>
    %cst_64 = arith.constant dense<0.000000e+00> : vector<8x16xf32>
    %204 = tpu.matmul %0, %203, %cst_64 {dimension_numbers = #tpu.dot_dimension_numbers<[1], [0], [0], [1], [0, 0, 1, 1], [], []>} : vector<8x4xbf16>, vector<4x16xbf16>, vector<8x16xf32> -> vector<8x16xf32>
    %205 = vector.extract_strided_slice %16 {offsets = [0, 5, 0], sizes = [4, 1, 16], strides = [1, 1, 1]} : vector<4x8x16xbf16> to vector<4x1x16xbf16>
    %206 = vector.shape_cast %205 : vector<4x1x16xbf16> to vector<4x16xbf16>
    %cst_65 = arith.constant dense<0.000000e+00> : vector<8x16xf32>
    %207 = tpu.matmul %0, %206, %cst_65 {dimension_numbers = #tpu.dot_dimension_numbers<[1], [0], [0], [1], [0, 0, 1, 1], [], []>} : vector<8x4xbf16>, vector<4x16xbf16>, vector<8x16xf32> -> vector<8x16xf32>
    %208 = vector.extract_strided_slice %204 {offsets = [0, 0], sizes = [8, 8], strides = [1, 1]} : vector<8x16xf32> to vector<8x8xf32>
    %209 = vector.extract_strided_slice %204 {offsets = [0, 8], sizes = [8, 8], strides = [1, 1]} : vector<8x16xf32> to vector<8x8xf32>
    %210 = arith.maximumf %208, %209 : vector<8x8xf32>
    %211 = vector.extract_strided_slice %207 {offsets = [0, 0], sizes = [8, 8], strides = [1, 1]} : vector<8x16xf32> to vector<8x8xf32>
    %212 = vector.extract_strided_slice %207 {offsets = [0, 8], sizes = [8, 8], strides = [1, 1]} : vector<8x16xf32> to vector<8x8xf32>
    %213 = arith.maximumf %211, %212 : vector<8x8xf32>
    %214 = arith.maximumf %210, %213 : vector<8x8xf32>
    %215 = arith.addf %214, %2 : vector<8x8xf32>
    %cst_66 = arith.constant dense<0.000000e+00> : vector<8xf32>
    %216 = vector.multi_reduction <add>, %215, %cst_66 [0] : vector<8x8xf32> to vector<8xf32>
    %217 = vector.shape_cast %216 : vector<8xf32> to vector<1x8xf32>
    %cst_67 = arith.constant 8.000000e+00 : f32
    %218 = vector.broadcast %cst_67 : f32 to vector<1x8xf32>
    %219 = arith.divf %217, %218 : vector<1x8xf32>
    %220 = vector.broadcast %219 : vector<1x8xf32> to vector<8x8xf32>
    %221 = arith.subf %215, %220 : vector<8x8xf32>
    %222 = arith.mulf %221, %221 : vector<8x8xf32>
    %cst_68 = arith.constant dense<0.000000e+00> : vector<8xf32>
    %223 = vector.multi_reduction <add>, %222, %cst_68 [0] : vector<8x8xf32> to vector<8xf32>
    %224 = vector.shape_cast %223 : vector<8xf32> to vector<1x8xf32>
    %cst_69 = arith.constant 8.000000e+00 : f32
    %225 = vector.broadcast %cst_69 : f32 to vector<1x8xf32>
    %226 = arith.divf %224, %225 : vector<1x8xf32>
    %227 = vector.broadcast %219 : vector<1x8xf32> to vector<8x8xf32>
    %228 = arith.subf %215, %227 : vector<8x8xf32>
    %cst_70 = arith.constant 9.99999974E-6 : f32
    %229 = vector.broadcast %cst_70 : f32 to vector<1x8xf32>
    %230 = arith.addf %226, %229 : vector<1x8xf32>
    %231 = math.rsqrt %230 : vector<1x8xf32>
    %232 = vector.broadcast %231 : vector<1x8xf32> to vector<8x8xf32>
    %233 = arith.mulf %228, %232 : vector<8x8xf32>
    %234 = arith.mulf %233, %4 : vector<8x8xf32>
    %235 = arith.addf %234, %6 : vector<8x8xf32>
    %c0_71 = arith.constant 0 : index
    %c0_72 = arith.constant 0 : index
    %c5 = arith.constant 5 : index
    %c0_73 = arith.constant 0 : index
    %236 = vector.load %arg5[%c0_71, %c0_72, %c5, %c0_73] : memref<1x8x8x8xf32, #tpu.memory_space<vmem>>, vector<1x8x1x8xf32>
    %237 = vector.shape_cast %236 : vector<1x8x1x8xf32> to vector<8x8xf32>
    %238 = vector.shape_cast %235 : vector<8x8xf32> to vector<1x8x1x8xf32>
    tpu.vector_store %arg5[%c0_71, %c0_72, %c5, %c0_73], %238 {strides = array<i32>} : memref<1x8x8x8xf32, #tpu.memory_space<vmem>>, vector<1x8x1x8xf32>,
    %239 = vector.extract_strided_slice %12 {offsets = [0, 6, 0], sizes = [4, 1, 16], strides = [1, 1, 1]} : vector<4x8x16xbf16> to vector<4x1x16xbf16>
    %240 = vector.shape_cast %239 : vector<4x1x16xbf16> to vector<4x16xbf16>
    %cst_74 = arith.constant dense<0.000000e+00> : vector<8x16xf32>
    %241 = tpu.matmul %0, %240, %cst_74 {dimension_numbers = #tpu.dot_dimension_numbers<[1], [0], [0], [1], [0, 0, 1, 1], [], []>} : vector<8x4xbf16>, vector<4x16xbf16>, vector<8x16xf32> -> vector<8x16xf32>
    %242 = vector.extract_strided_slice %16 {offsets = [0, 6, 0], sizes = [4, 1, 16], strides = [1, 1, 1]} : vector<4x8x16xbf16> to vector<4x1x16xbf16>
    %243 = vector.shape_cast %242 : vector<4x1x16xbf16> to vector<4x16xbf16>
    %cst_75 = arith.constant dense<0.000000e+00> : vector<8x16xf32>
    %244 = tpu.matmul %0, %243, %cst_75 {dimension_numbers = #tpu.dot_dimension_numbers<[1], [0], [0], [1], [0, 0, 1, 1], [], []>} : vector<8x4xbf16>, vector<4x16xbf16>, vector<8x16xf32> -> vector<8x16xf32>
    %245 = vector.extract_strided_slice %241 {offsets = [0, 0], sizes = [8, 8], strides = [1, 1]} : vector<8x16xf32> to vector<8x8xf32>
    %246 = vector.extract_strided_slice %241 {offsets = [0, 8], sizes = [8, 8], strides = [1, 1]} : vector<8x16xf32> to vector<8x8xf32>
    %247 = arith.maximumf %245, %246 : vector<8x8xf32>
    %248 = vector.extract_strided_slice %244 {offsets = [0, 0], sizes = [8, 8], strides = [1, 1]} : vector<8x16xf32> to vector<8x8xf32>
    %249 = vector.extract_strided_slice %244 {offsets = [0, 8], sizes = [8, 8], strides = [1, 1]} : vector<8x16xf32> to vector<8x8xf32>
    %250 = arith.maximumf %248, %249 : vector<8x8xf32>
    %251 = arith.maximumf %247, %250 : vector<8x8xf32>
    %252 = arith.addf %251, %2 : vector<8x8xf32>
    %cst_76 = arith.constant dense<0.000000e+00> : vector<8xf32>
    %253 = vector.multi_reduction <add>, %252, %cst_76 [0] : vector<8x8xf32> to vector<8xf32>
    %254 = vector.shape_cast %253 : vector<8xf32> to vector<1x8xf32>
    %cst_77 = arith.constant 8.000000e+00 : f32
    %255 = vector.broadcast %cst_77 : f32 to vector<1x8xf32>
    %256 = arith.divf %254, %255 : vector<1x8xf32>
    %257 = vector.broadcast %256 : vector<1x8xf32> to vector<8x8xf32>
    %258 = arith.subf %252, %257 : vector<8x8xf32>
    %259 = arith.mulf %258, %258 : vector<8x8xf32>
    %cst_78 = arith.constant dense<0.000000e+00> : vector<8xf32>
    %260 = vector.multi_reduction <add>, %259, %cst_78 [0] : vector<8x8xf32> to vector<8xf32>
    %261 = vector.shape_cast %260 : vector<8xf32> to vector<1x8xf32>
    %cst_79 = arith.constant 8.000000e+00 : f32
    %262 = vector.broadcast %cst_79 : f32 to vector<1x8xf32>
    %263 = arith.divf %261, %262 : vector<1x8xf32>
    %264 = vector.broadcast %256 : vector<1x8xf32> to vector<8x8xf32>
    %265 = arith.subf %252, %264 : vector<8x8xf32>
    %cst_80 = arith.constant 9.99999974E-6 : f32
    %266 = vector.broadcast %cst_80 : f32 to vector<1x8xf32>
    %267 = arith.addf %263, %266 : vector<1x8xf32>
    %268 = math.rsqrt %267 : vector<1x8xf32>
    %269 = vector.broadcast %268 : vector<1x8xf32> to vector<8x8xf32>
    %270 = arith.mulf %265, %269 : vector<8x8xf32>
    %271 = arith.mulf %270, %4 : vector<8x8xf32>
    %272 = arith.addf %271, %6 : vector<8x8xf32>
    %c0_81 = arith.constant 0 : index
    %c0_82 = arith.constant 0 : index
    %c6 = arith.constant 6 : index
    %c0_83 = arith.constant 0 : index
    %273 = vector.load %arg5[%c0_81, %c0_82, %c6, %c0_83] : memref<1x8x8x8xf32, #tpu.memory_space<vmem>>, vector<1x8x1x8xf32>
    %274 = vector.shape_cast %273 : vector<1x8x1x8xf32> to vector<8x8xf32>
    %275 = vector.shape_cast %272 : vector<8x8xf32> to vector<1x8x1x8xf32>
    tpu.vector_store %arg5[%c0_81, %c0_82, %c6, %c0_83], %275 {strides = array<i32>} : memref<1x8x8x8xf32, #tpu.memory_space<vmem>>, vector<1x8x1x8xf32>,
    %276 = vector.extract_strided_slice %12 {offsets = [0, 7, 0], sizes = [4, 1, 16], strides = [1, 1, 1]} : vector<4x8x16xbf16> to vector<4x1x16xbf16>
    %277 = vector.shape_cast %276 : vector<4x1x16xbf16> to vector<4x16xbf16>
    %cst_84 = arith.constant dense<0.000000e+00> : vector<8x16xf32>
    %278 = tpu.matmul %0, %277, %cst_84 {dimension_numbers = #tpu.dot_dimension_numbers<[1], [0], [0], [1], [0, 0, 1, 1], [], []>} : vector<8x4xbf16>, vector<4x16xbf16>, vector<8x16xf32> -> vector<8x16xf32>
    %279 = vector.extract_strided_slice %16 {offsets = [0, 7, 0], sizes = [4, 1, 16], strides = [1, 1, 1]} : vector<4x8x16xbf16> to vector<4x1x16xbf16>
    %280 = vector.shape_cast %279 : vector<4x1x16xbf16> to vector<4x16xbf16>
    %cst_85 = arith.constant dense<0.000000e+00> : vector<8x16xf32>
    %281 = tpu.matmul %0, %280, %cst_85 {dimension_numbers = #tpu.dot_dimension_numbers<[1], [0], [0], [1], [0, 0, 1, 1], [], []>} : vector<8x4xbf16>, vector<4x16xbf16>, vector<8x16xf32> -> vector<8x16xf32>
    %282 = vector.extract_strided_slice %278 {offsets = [0, 0], sizes = [8, 8], strides = [1, 1]} : vector<8x16xf32> to vector<8x8xf32>
    %283 = vector.extract_strided_slice %278 {offsets = [0, 8], sizes = [8, 8], strides = [1, 1]} : vector<8x16xf32> to vector<8x8xf32>
    %284 = arith.maximumf %282, %283 : vector<8x8xf32>
    %285 = vector.extract_strided_slice %281 {offsets = [0, 0], sizes = [8, 8], strides = [1, 1]} : vector<8x16xf32> to vector<8x8xf32>
    %286 = vector.extract_strided_slice %281 {offsets = [0, 8], sizes = [8, 8], strides = [1, 1]} : vector<8x16xf32> to vector<8x8xf32>
    %287 = arith.maximumf %285, %286 : vector<8x8xf32>
    %288 = arith.maximumf %284, %287 : vector<8x8xf32>
    %289 = arith.addf %288, %2 : vector<8x8xf32>
    %cst_86 = arith.constant dense<0.000000e+00> : vector<8xf32>
    %290 = vector.multi_reduction <add>, %289, %cst_86 [0] : vector<8x8xf32> to vector<8xf32>
    %291 = vector.shape_cast %290 : vector<8xf32> to vector<1x8xf32>
    %cst_87 = arith.constant 8.000000e+00 : f32
    %292 = vector.broadcast %cst_87 : f32 to vector<1x8xf32>
    %293 = arith.divf %291, %292 : vector<1x8xf32>
    %294 = vector.broadcast %293 : vector<1x8xf32> to vector<8x8xf32>
    %295 = arith.subf %289, %294 : vector<8x8xf32>
    %296 = arith.mulf %295, %295 : vector<8x8xf32>
    %cst_88 = arith.constant dense<0.000000e+00> : vector<8xf32>
    %297 = vector.multi_reduction <add>, %296, %cst_88 [0] : vector<8x8xf32> to vector<8xf32>
    %298 = vector.shape_cast %297 : vector<8xf32> to vector<1x8xf32>
    %cst_89 = arith.constant 8.000000e+00 : f32
    %299 = vector.broadcast %cst_89 : f32 to vector<1x8xf32>
    %300 = arith.divf %298, %299 : vector<1x8xf32>
    %301 = vector.broadcast %293 : vector<1x8xf32> to vector<8x8xf32>
    %302 = arith.subf %289, %301 : vector<8x8xf32>
    %cst_90 = arith.constant 9.99999974E-6 : f32
    %303 = vector.broadcast %cst_90 : f32 to vector<1x8xf32>
    %304 = arith.addf %300, %303 : vector<1x8xf32>
    %305 = math.rsqrt %304 : vector<1x8xf32>
    %306 = vector.broadcast %305 : vector<1x8xf32> to vector<8x8xf32>
    %307 = arith.mulf %302, %306 : vector<8x8xf32>
    %308 = arith.mulf %307, %4 : vector<8x8xf32>
    %309 = arith.addf %308, %6 : vector<8x8xf32>
    %c0_91 = arith.constant 0 : index
    %c0_92 = arith.constant 0 : index
    %c7 = arith.constant 7 : index
    %c0_93 = arith.constant 0 : index
    %310 = vector.load %arg5[%c0_91, %c0_92, %c7, %c0_93] : memref<1x8x8x8xf32, #tpu.memory_space<vmem>>, vector<1x8x1x8xf32>
    %311 = vector.shape_cast %310 : vector<1x8x1x8xf32> to vector<8x8xf32>
    %312 = vector.shape_cast %309 : vector<8x8xf32> to vector<1x8x1x8xf32>
    tpu.vector_store %arg5[%c0_91, %c0_92, %c7, %c0_93], %312 {strides = array<i32>} : memref<1x8x8x8xf32, #tpu.memory_space<vmem>>, vector<1x8x1x8xf32>,
    return
  }
  func.func @transform_0(%arg0: i32, %arg1: i32) -> (i32, i32, i32, i32) {
    %c0_i32 = arith.constant 0 : i32
    %c0_i32_0 = arith.constant 0 : i32
    %c0_i32_1 = arith.constant 0 : i32
    return %arg0, %c0_i32, %arg1, %c0_i32_0 : i32, i32, i32, i32
  }
  func.func @transform_1(%arg0: i32, %arg1: i32) -> (i32, i32) {
    %c0_i32 = arith.constant 0 : i32
    %c0_i32_0 = arith.constant 0 : i32
    %c0_i32_1 = arith.constant 0 : i32
    return %c0_i32, %c0_i32_0 : i32, i32
  }
  func.func @transform_2(%arg0: i32, %arg1: i32) -> (i32, i32, i32) {
    %c0_i32 = arith.constant 0 : i32
    %c0_i32_0 = arith.constant 0 : i32
    %c0_i32_1 = arith.constant 0 : i32
    %c0_i32_2 = arith.constant 0 : i32
    return %c0_i32, %c0_i32_0, %c0_i32_1 : i32, i32, i32
  }
  func.func @transform_3(%arg0: i32, %arg1: i32) -> (i32, i32, i32, i32) {
    %c0_i32 = arith.constant 0 : i32
    %c0_i32_0 = arith.constant 0 : i32
    %c0_i32_1 = arith.constant 0 : i32
    return %arg0, %c0_i32, %arg1, %c0_i32_0 : i32, i32, i32, i32
  }
}

</mosaic_0001>

<bundles_post_ra>
// kernel: multires_block_1.1
= control target key start
LH: loop header
LB: loop body
LE: loop exit
PB: predicated region body
PF: predicated region fallthrough
CT: control target
= control target key end

     0   :  { %s2214_s12 = smov 0   ;;  %s2216_s13 = smov 0   ;;  %s2851_s0 = inlined_call_operand.vmem [shape: u32[2,4,8,16], index: 0, kind: input, shape index: {}]   ;;  %s2852_s1 = inlined_call_operand.vmem [shape: bf16[8,4], index: 1, kind: input, shape index: {}]   ;;  %s2853_s2 = inlined_call_operand.vmem [shape: f32[3,8,8], index: 2, kind: input, shape index: {}]   ;;  %s2854_s3 = inlined_call_operand.vmem [shape: f32[2,8,8,8], index: 3, kind: output, shape index: {}]  }
   0x1   :  { %s2218_s14 = smov 0  }
   0x2 LB: > { %s25_s15 = sadd.s32 1, %s2184_s13  ;;  %p1967_p0 = scmp.ge.s32.totalorder %s2188_s14, 1  ;;  %s2188_s14 = sphi %s2218_s14, %s13_s14   ;;  %s2184_s13 = sphi %s2216_s13, %s2856_s13   ;;  %s2180_s12 = sphi %s2214_s12, %s2855_s12  }
   0x3   : > { %p27_p1 = scmp.ge.s32.totalorder %s25_s15, 2  ;;  %p156_p2 = scmp.lt.s32.totalorder %s2188_s14, 3 }
   0x5   : > { %s2858_s15 = smov (%p27_p1, %s25_s15), 0  ;;  %p157_p3 = pnand %p1967_p0, %p156_p2 }
   0x6   : > { %p186_p4 = scmp.lt.s32.totalorder (!%p157_p3), %s2180_s12, 1  ;;  %v2190_v0 = vmov (!%p157_p3), 0.0   ;;  %vm2191_vm0 = vmmov (!%p157_p3), 0   ;;  %vm246_vm1 = vcmask (!%p157_p3), 1041409   ;;  %vm249_vm2 = vcmask (!%p157_p3), 1042434   ;;  %s2192_s22 = smov (!%p157_p3), 120  }
   0x7   : > { %160 = sbr.rel (%p157_p3) target bundleno = 501 (0x1f5), region = 32  ;;  %2026 = vmatprep.subr.bf16.mxu0 (!%p157_p3), %v2190_v0  ;;  %2032 = vmatprep.subr.bf16.mxu1 (!%p157_p3), %v2190_v0  ;;  %vm252_vm3 = vcmask (!%p157_p3), 1043459   ;;  %vm259_vm4 = vcmask (!%p157_p3), 1041408   ;;  %vm255_vm5 = vcmask (!%p157_p3), 31744   ;;  %v2297_v62 = vld [vmem:[%s2852_s1] sm:$0xf] (!%p157_p3) }
   0x8   : > { %2028 = vmatprep.mubr.msk.bf16.mxu0 (!%p157_p3), %vm2191_vm0, %v2190_v0  ;;  %2034 = vmatprep.mubr.msk.bf16.mxu1 (!%p157_p3), %vm2191_vm0, %v2190_v0  ;;  %vm373_vm6 = vcmask (!%p157_p3), 64512   ;;  %vm456_vm7 = vcmask (!%p157_p3), 57344  }
   0xe   : > { %s2860_s12 = smov (!%p186_p4, %s2180_s12), 1 }
   0xf   : > { %s1992_s16 = sshll.u32 %s2860_s12, 5  ;;  %s1993_s29 = sshll.u32 %s2860_s12, 6 }
  0x10   : > { %s193_s19 = scalar_lea.vmem %s2851_s0, %s1992_s16  ;;  %s2627_s5 = scalar_lea.vmem %s2854_s3, %s1993_s29 }
  0x11   : > { %v209_v1 = vld [vmem:[%s193_s19] sm:$0xff]  ;;  %v210_v2 = vld [vmem:[%s193_s19 + $0x8] sm:$0xff]  ;;  %v211_v3 = vld [vmem:[%s193_s19 + $0x10] sm:$0xff] }
  0x12   : > { %v212_v4 = vld [vmem:[%s193_s19 + $0x18] sm:$0xff]  ;;  %v213_v5 = vshll.u32 %v209_v1, 16  ;;  %v214_v6 = vshll.u32 %v210_v2, 16  ;;  %v215_v7 = vshll.u32 %v211_v3, 16  ;;  %v225_v8 = vand.u32 4294901760, %v209_v1 }
  0x13   : > { %v216_v9 = vshll.u32 %v212_v4, 16  ;;  %v226_v10 = vand.u32 4294901760, %v210_v2  ;;  %v227_v11 = vand.u32 4294901760, %v211_v3  ;;  %v228_v12 = vand.u32 4294901760, %v212_v4 }
  0x14   : > { %v221_v13 = vpack.c.bf16 %v213_v5, %v213_v5  ;;  %v222_v14 = vpack.c.bf16 %v214_v6, %v214_v6  ;;  %v223_v15 = vpack.c.bf16 %v215_v7, %v215_v7  ;;  %v233_v16 = vpack.c.bf16 %v225_v8, %v225_v8 }
  0x15   : > { %v224_v17 = vpack.c.bf16 %v216_v9, %v216_v9  ;;  %v234_v18 = vpack.c.bf16 %v226_v10, %v226_v10  ;;  %v235_v19 = vpack.c.bf16 %v227_v11, %v227_v11  ;;  %v236_v20 = vpack.c.bf16 %v228_v12, %v228_v12 }
  0x16   : > { %v2244_v21 = vunpack.c.l.b16 %v221_v13  ;;  %v2246_v22 = vunpack.c.l.b16 %v222_v14  ;;  %v2248_v23 = vunpack.c.l.b16 %v223_v15  ;;  %v2250_v24 = vunpack.c.l.b16 %v233_v16 }
  0x17   : > { %v2252_v25 = vunpack.c.l.b16 %v224_v17  ;;  %v2254_v26 = vunpack.c.l.b16 %v234_v18  ;;  %v2256_v27 = vunpack.c.l.b16 %v235_v19  ;;  %v2258_v28 = vunpack.c.l.b16 %v236_v20 }
  0x18   : > { %v245_v29 = vrot.slane %v2246_v22, 7  ;;  %v248_v30 = vrot.slane %v2248_v23, 6  ;;  %v465_v31 = vrot.slane %v2244_v21, 1  ;;  %v467_v32 = vrot.slane %v2248_v23, 7 }
  0x19   : > { %v251_v33 = vrot.slane %v2252_v25, 5  ;;  %v311_v34 = vrot.slane %v2254_v26, 7  ;;  %v313_v35 = vrot.slane %v2256_v27, 6  ;;  %v315_v36 = vrot.slane %v2258_v28, 5 }
  0x1a   : > { %v247_v37 = vsel %vm246_vm1, %v245_v29, %v2244_v21  ;;  %v466_v38 = vsel %vm246_vm1, %v2246_v22, %v465_v31  ;;  %v469_v39 = vrot.slane %v2252_v25, 6  ;;  %v515_v40 = vrot.slane %v2250_v24, 1 }
  0x1b   : > { %v250_v41 = vsel %vm249_vm2, %v248_v30, %v247_v37  ;;  %v312_v42 = vsel %vm246_vm1, %v311_v34, %v2250_v24  ;;  %v468_v43 = vsel %vm249_vm2, %v467_v32, %v466_v38  ;;  %v517_v44 = vrot.slane %v2256_v27, 7 }
  0x1c   : > { %v253_v45 = vsel %vm252_vm3, %v251_v33, %v250_v41  ;;  %v314_v46 = vsel %vm249_vm2, %v313_v35, %v312_v42  ;;  %v470_v47 = vsel %vm252_vm3, %v469_v39, %v468_v43  ;;  %v516_v48 = vsel %vm246_vm1, %v2254_v26, %v515_v40 }
  0x1d   : > { %v254_v49 = vpack.c.b16 %v253_v45, %v253_v45  ;;  %v316_v50 = vsel %vm252_vm3, %v315_v36, %v314_v46  ;;  %v471_v51 = vpack.c.b16 %v470_v47, %v470_v47  ;;  %v518_v52 = vsel %vm249_vm2, %v517_v44, %v516_v48 }
  0x1e   : > { %v317_v53 = vpack.c.b16 %v316_v50, %v316_v50  ;;  %v519_v54 = vrot.slane %v2258_v28, 6  ;;  %v666_v55 = vrot.slane %v2244_v21, 2  ;;  %v667_v56 = vrot.slane %v2246_v22, 1 }
  0x1f   : > { %v261_v57 = vsel %vm259_vm4, %v254_v49, 0  ;;  %v473_v58 = vsel %vm259_vm4, %v471_v51, 0  ;;  %v670_v59 = vrot.slane %v2252_v25, 7  ;;  %v716_v60 = vrot.slane %v2250_v24, 2 }
  0x20   : > { %2027 = vmatpush3.bf16.msra.mxu0 %v261_v57  ;;  %v319_v61 = vsel %vm259_vm4, %v317_v53, 0  ;;  %v520_v63 = vsel %vm252_vm3, %v519_v54, %v518_v52  ;;  %v668_v1 = vsel %vm246_vm1, %v667_v56, %v666_v55  ;;  %v717_v2 = vrot.slane %v2254_v26, 1 }
  0x21   : > { %2033 = vmatpush3.bf16.msra.mxu1 %v319_v61  ;;  %2038 = vmatprep.subr.bf16.mxu0 %v2190_v0  ;;  %v521_v3 = vpack.c.b16 %v520_v63, %v520_v63  ;;  %v669_v4 = vsel %vm249_vm2, %v2248_v23, %v668_v1  ;;  %v720_v5 = vrot.slane %v2258_v28, 7  ;;  %v867_v6 = vrot.slane %v2244_v21, 3 }
  0x22   : > { %2044 = vmatprep.subr.bf16.mxu1 %v2190_v0  ;;  %v671_v7 = vsel %vm252_vm3, %v670_v59, %v669_v4  ;;  %v718_v8 = vsel %vm246_vm1, %v717_v2, %v716_v60  ;;  %v868_v9 = vrot.slane %v2246_v22, 2  ;;  %v870_v12 = vrot.slane %v2248_v23, 1 }
  0x23   : > { %2029 = vmatmul.mubr.msk.bf16.vlgmr.msra.gmra.mrb[0].mxu0 %vm255_vm5, %v2297_v62  ;;  %v523_v10 = vsel %vm259_vm4, %v521_v3, 0  ;;  %v719_v11 = vsel %vm249_vm2, %v2256_v27, %v718_v8  ;;  %v917_v13 = vrot.slane %v2250_v24, 3  ;;  %v918_v16 = vrot.slane %v2254_v26, 2 }
  0x24   : > { %2035 = vmatmul.mubr.msk.bf16.vlgmr.msra.gmra.mrb[0].mxu1 %vm255_vm5, %v2297_v62  ;;  %2039 = vmatpush3.bf16.msra.mxu0 %v473_v58  ;;  %v721_v14 = vsel %vm252_vm3, %v720_v5, %v719_v11  ;;  %v869_v15 = vsel %vm246_vm1, %v868_v9, %v867_v6  ;;  %v920_v17 = vrot.slane %v2256_v27, 1  ;;  %v672_v18 = vpack.c.b16 %v671_v7, %v671_v7 }
  0x25   : > { %2045 = vmatpush3.bf16.msra.mxu1 %v523_v10  ;;  %2040 = vmatprep.mubr.msk.bf16.mxu0 %vm2191_vm0, %v2190_v0  ;;  %v722_v19 = vpack.c.b16 %v721_v14, %v721_v14  ;;  %v919_v20 = vsel %vm246_vm1, %v918_v16, %v917_v13  ;;  %v871_v29 = vsel %vm249_vm2, %v870_v12, %v869_v15  ;;  %v1068_v31 = vrot.slane %v2244_v21, 4 }
  0x26   : > { %2046 = vmatprep.mubr.msk.bf16.mxu1 %vm2191_vm0, %v2190_v0  ;;  %2050 = vmatprep.subr.bf16.mxu0 %v2190_v0  ;;  %v921_v30 = vsel %vm249_vm2, %v920_v17, %v919_v20  ;;  %v1069_v32 = vrot.slane %v2246_v22, 3  ;;  %v674_v33 = vsel %vm259_vm4, %v672_v18, 0  ;;  %v1119_v34 = vrot.slane %v2250_v24, 4 }
  0x27   : > { %2056 = vmatprep.subr.bf16.mxu1 %v2190_v0  ;;  %v1120_v35 = vrot.slane %v2254_v26, 3  ;;  %v724_v36 = vsel %vm259_vm4, %v722_v19, 0  ;;  %v872_v37 = vsel %vm252_vm3, %v2252_v25, %v871_v29  ;;  %v922_v38 = vsel %vm252_vm3, %v2258_v28, %v921_v30 }
  0x28   : > { %v1071_v39 = vrot.slane %v2248_v23, 2  ;;  %v1070_v40 = vsel %vm246_vm1, %v1069_v32, %v1068_v31  ;;  %v1122_v41 = vrot.slane %v2256_v27, 2  ;;  %v873_v42 = vpack.c.b16 %v872_v37, %v872_v37 }
  0x29   : > { %v1121_v43 = vsel %vm246_vm1, %v1120_v35, %v1119_v34  ;;  %v923_v44 = vpack.c.b16 %v922_v38, %v922_v38  ;;  %v1073_v45 = vrot.slane %v2252_v25, 1  ;;  %v1124_v47 = vrot.slane %v2258_v28, 1 }
  0x2a   : > { %v1072_v46 = vsel %vm249_vm2, %v1071_v39, %v1070_v40  ;;  %v1123_v48 = vsel %vm249_vm2, %v1122_v41, %v1121_v43  ;;  %v1271_v49 = vrot.slane %v2244_v21, 5  ;;  %v1272_v50 = vrot.slane %v2246_v22, 4 }
  0x2b   : > { %2041 = vmatmul.mubr.msk.bf16.vlgmr.msra.gmra.mrb[4].mxu0 %vm255_vm5, %v2297_v62  ;;  %v875_v51 = vsel %vm259_vm4, %v873_v42, 0  ;;  %v1322_v52 = vrot.slane %v2250_v24, 5  ;;  %v1323_v53 = vrot.slane %v2254_v26, 4  ;;  %v925_v54 = vsel %vm259_vm4, %v923_v44, 0 }
  0x2c   : > { %2047 = vmatmul.mubr.msk.bf16.vlgmr.msra.gmra.mrb[4].mxu1 %vm255_vm5, %v2297_v62  ;;  %2051 = vmatpush3.bf16.msra.mxu0 %v674_v33  ;;  %v1074_v55 = vsel %vm252_vm3, %v1073_v45, %v1072_v46  ;;  %v1125_v56 = vsel %vm252_vm3, %v1124_v47, %v1123_v48  ;;  %v1274_v57 = vrot.slane %v2248_v23, 3  ;;  %v1273_v58 = vsel %vm246_vm1, %v1272_v50, %v1271_v49 }
  0x2d   : > { %2057 = vmatpush3.bf16.msra.mxu1 %v724_v36  ;;  %2052 = vmatprep.mubr.msk.bf16.mxu0 %vm2191_vm0, %v2190_v0  ;;  %v1325_v59 = vrot.slane %v2256_v27, 3  ;;  %v1075_v60 = vpack.c.b16 %v1074_v55, %v1074_v55  ;;  %v1324_v61 = vsel %vm246_vm1, %v1323_v53, %v1322_v52  ;;  %v1126_v63 = vpack.c.b16 %v1125_v56, %v1125_v56 }
  0x2e   : > { %2058 = vmatprep.mubr.msk.bf16.mxu1 %vm2191_vm0, %v2190_v0  ;;  %2062 = vmatprep.subr.bf16.mxu0 %v2190_v0  ;;  %v1276_v1 = vrot.slane %v2252_v25, 2  ;;  %v1275_v2 = vsel %vm249_vm2, %v1274_v57, %v1273_v58  ;;  %v1327_v3 = vrot.slane %v2258_v28, 2  ;;  %v1474_v5 = vrot.slane %v2244_v21, 6 }
  0x2f   : > { %2068 = vmatprep.subr.bf16.mxu1 %v2190_v0  ;;  %v1326_v4 = vsel %vm249_vm2, %v1325_v59, %v1324_v61  ;;  %v1475_v6 = vrot.slane %v2246_v22, 5  ;;  %v1077_v7 = vsel %vm259_vm4, %v1075_v60, 0  ;;  %v1525_v8 = vrot.slane %v2250_v24, 6 }
  0x30   : > { %v1526_v9 = vrot.slane %v2254_v26, 5  ;;  %v1128_v10 = vsel %vm259_vm4, %v1126_v63, 0  ;;  %v1277_v11 = vsel %vm252_vm3, %v1276_v1, %v1275_v2  ;;  %v1328_v12 = vsel %vm252_vm3, %v1327_v3, %v1326_v4 }
  0x31   : > { %v1477_v13 = vrot.slane %v2248_v23, 4  ;;  %v1476_v14 = vsel %vm246_vm1, %v1475_v6, %v1474_v5  ;;  %v1528_v15 = vrot.slane %v2256_v27, 4  ;;  %v1278_v16 = vpack.c.b16 %v1277_v11, %v1277_v11 }
  0x32   : > { %v1527_v17 = vsel %vm246_vm1, %v1526_v9, %v1525_v8  ;;  %v1329_v18 = vpack.c.b16 %v1328_v12, %v1328_v12  ;;  %v1479_v19 = vrot.slane %v2252_v25, 3  ;;  %v1530_v29 = vrot.slane %v2258_v28, 3 }
  0x33   : > { %2053 = vmatmul.mubr.msk.bf16.vlgmr.msra.gmra.mrb[8].mxu0 %vm255_vm5, %v2297_v62  ;;  %v1478_v20 = vsel %vm249_vm2, %v1477_v13, %v1476_v14  ;;  %v1529_v30 = vsel %vm249_vm2, %v1528_v15, %v1527_v17  ;;  %v1677_v31 = vrot.slane %v2244_v21, 7  ;;  %v1678_v32 = vrot.slane %v2246_v22, 6 }
  0x34   : > { %2059 = vmatmul.mubr.msk.bf16.vlgmr.msra.gmra.mrb[8].mxu1 %vm255_vm5, %v2297_v62  ;;  %2063 = vmatpush3.bf16.msra.mxu0 %v875_v51  ;;  %v1280_v33 = vsel %vm259_vm4, %v1278_v16, 0  ;;  %v1728_v34 = vrot.slane %v2250_v24, 7  ;;  %v1729_v35 = vrot.slane %v2254_v26, 6  ;;  %v1331_v36 = vsel %vm259_vm4, %v1329_v18, 0 }
  0x35   : > { %2069 = vmatpush3.bf16.msra.mxu1 %v925_v54  ;;  %2064 = vmatprep.mubr.msk.bf16.mxu0 %vm2191_vm0, %v2190_v0  ;;  %v1480_v37 = vsel %vm252_vm3, %v1479_v19, %v1478_v20  ;;  %v1531_v38 = vsel %vm252_vm3, %v1530_v29, %v1529_v30  ;;  %v1680_v39 = vrot.slane %v2248_v23, 5  ;;  %v1679_v21 = vsel %vm246_vm1, %v1678_v32, %v1677_v31 }
  0x36   : > { %2070 = vmatprep.mubr.msk.bf16.mxu1 %vm2191_vm0, %v2190_v0  ;;  %2074 = vmatprep.subr.bf16.mxu0 %v2190_v0  ;;  %v1731_v22 = vrot.slane %v2256_v27, 5  ;;  %v1481_v24 = vpack.c.b16 %v1480_v37, %v1480_v37  ;;  %v1730_v26 = vsel %vm246_vm1, %v1729_v35, %v1728_v34  ;;  %v1532_v23 = vpack.c.b16 %v1531_v38, %v1531_v38 }
  0x37   : > { %2080 = vmatprep.subr.bf16.mxu1 %v2190_v0  ;;  %v1682_v40 = vrot.slane %v2252_v25, 4  ;;  %v1681_v41 = vsel %vm249_vm2, %v1680_v39, %v1679_v21  ;;  %v1733_v27 = vrot.slane %v2258_v28, 4 }
  0x38   : > { %v1732_v42 = vsel %vm249_vm2, %v1731_v22, %v1730_v26  ;;  %v1483_v43 = vsel %vm259_vm4, %v1481_v24, 0  ;;  %v1534_v44 = vsel %vm259_vm4, %v1532_v23, 0 }
  0x39   : > { %v1683_v45 = vsel %vm252_vm3, %v1682_v40, %v1681_v41  ;;  %v1734_v46 = vsel %vm252_vm3, %v1733_v27, %v1732_v42 }
  0x3a   : > { %v1684_v25 = vpack.c.b16 %v1683_v45, %v1683_v45  ;;  %v1735_v28 = vpack.c.b16 %v1734_v46, %v1734_v46 }
  0x3b   : > { %2065 = vmatmul.mubr.msk.bf16.vlgmr.msra.gmra.mrb[12].mxu0 %vm255_vm5, %v2297_v62 }
  0x3c   : > { %2071 = vmatmul.mubr.msk.bf16.vlgmr.msra.gmra.mrb[12].mxu1 %vm255_vm5, %v2297_v62  ;;  %2075 = vmatpush3.bf16.msra.mxu0 %v1077_v7  ;;  %v1686_v47 = vsel %vm259_vm4, %v1684_v25, 0  ;;  %v1737_v48 = vsel %vm259_vm4, %v1735_v28, 0 }
  0x3d   : > { %2081 = vmatpush3.bf16.msra.mxu1 %v1128_v10  ;;  %2076 = vmatprep.mubr.msk.bf16.mxu0 %vm2191_vm0, %v2190_v0 }
  0x3e   : > { %2082 = vmatprep.mubr.msk.bf16.mxu1 %vm2191_vm0, %v2190_v0  ;;  %2086 = vmatprep.subr.bf16.mxu0 %v2190_v0 }
  0x3f   : > { %2092 = vmatprep.subr.bf16.mxu1 %v2190_v0 }
  0x43   : > { %2077 = vmatmul.mubr.msk.bf16.vlgmr.msra.gmra.mrb[16].mxu0 %vm255_vm5, %v2297_v62 }
  0x44   : > { %2083 = vmatmul.mubr.msk.bf16.vlgmr.msra.gmra.mrb[16].mxu1 %vm255_vm5, %v2297_v62  ;;  %2087 = vmatpush3.bf16.msra.mxu0 %v1280_v33 }
  0x45   : > { %2093 = vmatpush3.bf16.msra.mxu1 %v1331_v36  ;;  %2088 = vmatprep.mubr.msk.bf16.mxu0 %vm2191_vm0, %v2190_v0 }
  0x46   : > { %2094 = vmatprep.mubr.msk.bf16.mxu1 %vm2191_vm0, %v2190_v0  ;;  %2098 = vmatprep.subr.bf16.mxu0 %v2190_v0 }
  0x47   : > { %2104 = vmatprep.subr.bf16.mxu1 %v2190_v0 }
  0x4b   : > { %2089 = vmatmul.mubr.msk.bf16.vlgmr.msra.gmra.mrb[20].mxu0 %vm255_vm5, %v2297_v62 }
  0x4c   : > { %2095 = vmatmul.mubr.msk.bf16.vlgmr.msra.gmra.mrb[20].mxu1 %vm255_vm5, %v2297_v62  ;;  %2099 = vmatpush3.bf16.msra.mxu0 %v1483_v43 }
  0x4d   : > { %2105 = vmatpush3.bf16.msra.mxu1 %v1534_v44  ;;  %2100 = vmatprep.mubr.msk.bf16.mxu0 %vm2191_vm0, %v2190_v0 }
  0x4e   : > { %2106 = vmatprep.mubr.msk.bf16.mxu1 %vm2191_vm0, %v2190_v0  ;;  %2110 = vmatprep.subr.bf16.mxu0 %v2190_v0 }
  0x4f   : > { %2116 = vmatprep.subr.bf16.mxu1 %v2190_v0 }
  0x53   : > { %2101 = vmatmul.mubr.msk.bf16.vlgmr.msra.gmra.mrb[24].mxu0 %vm255_vm5, %v2297_v62 }
  0x54   : > { %2107 = vmatmul.mubr.msk.bf16.vlgmr.msra.gmra.mrb[24].mxu1 %vm255_vm5, %v2297_v62  ;;  %2111 = vmatpush3.bf16.msra.mxu0 %v1686_v47 }
  0x55   : > { %2117 = vmatpush3.bf16.msra.mxu1 %v1737_v48  ;;  %2112 = vmatprep.mubr.msk.bf16.mxu0 %vm2191_vm0, %v2190_v0 }
  0x56   : > { %2118 = vmatprep.mubr.msk.bf16.mxu1 %vm2191_vm0, %v2190_v0 }
  0x5b   : > { %2113 = vmatmul.mubr.msk.bf16.vlgmr.msra.gmra.mrb[28].mxu0 %vm255_vm5, %v2297_v62 }
  0x5c   : > { %2119 = vmatmul.mubr.msk.bf16.vlgmr.msra.gmra.mrb[28].mxu1 %vm255_vm5, %v2297_v62 }
  0xf6   : > { %v2467_v49 = vpop.f32.mrb[0].mxu0 }
  0xf7   : > { %v2469_v50 = vpop.f32.mrb[0].mxu1  ;;  %362 = vrot.lane.b32.xlu0 %v2467_v49, %s2192_s22  ;;  %v2030_v51 = vpop.f32.mrb[1].mxu0 }
  0xf8   : > { %v2036_v52 = vpop.f32.mrb[1].mxu1  ;;  %v300_v53 = vpop.f32.mrb[2].mxu0 }
  0xf9   : > { %v358_v54 = vpop.f32.mrb[2].mxu1  ;;  %v2031_v55 = vpop.f32.mrb[3].mxu0 }
  0xfa   : > { %v2037_v0 = vpop.f32.mrb[3].mxu1  ;;  %v2536_v55 = vld [vmem:[%s2853_s2] sm:$0xff] }
  0xfb   : > { %367 = vrot.lane.b32.xlu0 %v2469_v50, %s2192_s22 }
  0xfe   : > { %v2475_v56 = vpop.f32.mrb[4].mxu0 }
  0xff   : > { %v2477_v62 = vpop.f32.mrb[4].mxu1  ;;  %566 = vrot.lane.b32.xlu1 %v2475_v56, %s2192_s22  ;;  %v2042_v57 = vpop.f32.mrb[5].mxu0 }
 0x100   : > { %v2048_v58 = vpop.f32.mrb[5].mxu1  ;;  %v512_v59 = vpop.f32.mrb[6].mxu0 }
 0x101   : > { %v562_v60 = vpop.f32.mrb[6].mxu1  ;;  %v2043_v61 = vpop.f32.mrb[7].mxu0 }
 0x102   : > { %v2049_v63 = vpop.f32.mrb[7].mxu1 }
 0x103   : > { %571 = vrot.lane.b32.xlu1 %v2477_v62, %s2192_s22 }
 0x106   : > { %v2483_v1 = vpop.f32.mrb[8].mxu0 }
 0x107   : > { %v2485_v2 = vpop.f32.mrb[8].mxu1  ;;  %767 = vrot.lane.b32.xlu0 %v2483_v1, %s2192_s22  ;;  %v2054_v3 = vpop.f32.mrb[9].mxu0 }
 0x108   : > { %v2060_v4 = vpop.f32.mrb[9].mxu1  ;;  %772 = vrot.lane.b32.xlu1 %v2485_v2, %s2192_s22  ;;  %v713_v5 = vpop.f32.mrb[10].mxu0 }
 0x109   : > { %v763_v6 = vpop.f32.mrb[10].mxu1  ;;  %v2055_v7 = vpop.f32.mrb[11].mxu0 }
 0x10a   : > { %v2061_v8 = vpop.f32.mrb[11].mxu1 }
 0x10e   : > { %v2491_v9 = vpop.f32.mrb[12].mxu0 }
 0x10f   : > { %v2493_v10 = vpop.f32.mrb[12].mxu1  ;;  %968 = vrot.lane.b32.xlu0 %v2491_v9, %s2192_s22  ;;  %v2066_v11 = vpop.f32.mrb[13].mxu0 }
 0x110   : > { %v2072_v12 = vpop.f32.mrb[13].mxu1  ;;  %973 = vrot.lane.b32.xlu1 %v2493_v10, %s2192_s22  ;;  %v914_v13 = vpop.f32.mrb[14].mxu0 }
 0x111   : > { %v964_v14 = vpop.f32.mrb[14].mxu1  ;;  %v2067_v15 = vpop.f32.mrb[15].mxu0 }
 0x112   : > { %v2073_v16 = vpop.f32.mrb[15].mxu1 }
 0x116   : > { %v2499_v17 = vpop.f32.mrb[16].mxu0 }
 0x117   : > { %v2501_v18 = vpop.f32.mrb[16].mxu1  ;;  %1171 = vrot.lane.b32.xlu0 %v2499_v17, %s2192_s22  ;;  %v2078_v19 = vpop.f32.mrb[17].mxu0 }
 0x118   : > { %v2084_v20 = vpop.f32.mrb[17].mxu1  ;;  %1176 = vrot.lane.b32.xlu1 %v2501_v18, %s2192_s22  ;;  %v1116_v29 = vpop.f32.mrb[18].mxu0 }
 0x119   : > { %v1167_v30 = vpop.f32.mrb[18].mxu1  ;;  %v2079_v31 = vpop.f32.mrb[19].mxu0 }
 0x11a   : > { %v2085_v32 = vpop.f32.mrb[19].mxu1 }
 0x11e   : > { %v2507_v33 = vpop.f32.mrb[20].mxu0 }
 0x11f   : > { %v2509_v34 = vpop.f32.mrb[20].mxu1  ;;  %1374 = vrot.lane.b32.xlu0 %v2507_v33, %s2192_s22  ;;  %v2090_v35 = vpop.f32.mrb[21].mxu0 }
 0x120   : > { %v2096_v36 = vpop.f32.mrb[21].mxu1  ;;  %1379 = vrot.lane.b32.xlu1 %v2509_v34, %s2192_s22  ;;  %v1319_v37 = vpop.f32.mrb[22].mxu0 }
 0x121   : > { %v1370_v38 = vpop.f32.mrb[22].mxu1  ;;  %v2091_v39 = vpop.f32.mrb[23].mxu0 }
 0x122   : > { %v2097_v21 = vpop.f32.mrb[23].mxu1 }
 0x126   : > { %v2515_v22 = vpop.f32.mrb[24].mxu0 }
 0x127   : > { %v2517_v24 = vpop.f32.mrb[24].mxu1  ;;  %1577 = vrot.lane.b32.xlu0 %v2515_v22, %s2192_s22  ;;  %v2102_v26 = vpop.f32.mrb[25].mxu0 }
 0x128   : > { %v2108_v23 = vpop.f32.mrb[25].mxu1  ;;  %1582 = vrot.lane.b32.xlu1 %v2517_v24, %s2192_s22  ;;  %v1522_v40 = vpop.f32.mrb[26].mxu0 }
 0x129   : > { %v1573_v41 = vpop.f32.mrb[26].mxu1  ;;  %v2103_v27 = vpop.f32.mrb[27].mxu0 }
 0x12a   : > { %v2109_v42 = vpop.f32.mrb[27].mxu1 }
 0x12e   : > { %v2523_v43 = vpop.f32.mrb[28].mxu0 }
 0x12f   : > { %v2525_v44 = vpop.f32.mrb[28].mxu1  ;;  %1780 = vrot.lane.b32.xlu0 %v2523_v43, %s2192_s22  ;;  %v2114_v45 = vpop.f32.mrb[29].mxu0 }
 0x130   : > { %v2120_v46 = vpop.f32.mrb[29].mxu1  ;;  %1785 = vrot.lane.b32.xlu1 %v2525_v44, %s2192_s22  ;;  %v1725_v25 = vpop.f32.mrb[30].mxu0 }
 0x131   : > { %v1776_v28 = vpop.f32.mrb[30].mxu1  ;;  %v2115_v47 = vpop.f32.mrb[31].mxu0 }
 0x132   : > { %v2121_v48 = vpop.f32.mrb[31].mxu1 }
 0x169   : > { %v363_v51 = vpop.permute.xlu0 %362 }
 0x16a   : > { %v365_v53 = vmax.f32 %v2467_v49, %v363_v51 }
 0x16d   : > { %v368_v52 = vpop.permute.xlu0 %367 }
 0x16e   : > { %v370_v54 = vmax.f32 %v2469_v50, %v368_v52 }
 0x170   : > { %v371_v0 = vmax.f32 %v365_v53, %v370_v54 }
 0x171   : > { %v567_v57 = vpop.permute.xlu1 %566 }
 0x172   : > { %v372_v58 = vadd.f32 %v371_v0, %v2536_v55  ;;  %v569_v63 = vmax.f32 %v2475_v56, %v567_v57 }
 0x174   : > { %v374_v59 = vsel %vm373_vm6, %v372_v58, 0.0 }
 0x175   : > { %v375_v60 = vrot.slane %v374_v59, 4  ;;  %v572_v61 = vpop.permute.xlu1 %571 }
 0x176   : > { %v574_v49 = vmax.f32 %v2477_v62, %v572_v61 }
 0x177   : > { %v376_v3 = vadd.f32 %v375_v60, %v374_v59 }
 0x178   : > { %v575_v50 = vmax.f32 %v569_v63, %v574_v49 }
 0x179   : > { %v377_v4 = vrot.slane %v376_v3, 2  ;;  %v768_v5 = vpop.permute.xlu0 %767 }
 0x17a   : > { %v576_v6 = vadd.f32 %v575_v50, %v2536_v55  ;;  %v773_v7 = vpop.permute.xlu1 %772  ;;  %v770_v8 = vmax.f32 %v2483_v1, %v768_v5 }
 0x17b   : > { %v378_v11 = vadd.f32 %v377_v4, %v376_v3  ;;  %v775_v12 = vmax.f32 %v2485_v2, %v773_v7 }
 0x17c   : > { %v577_v13 = vsel %vm373_vm6, %v576_v6, 0.0 }
 0x17d   : > { %v379_v14 = vrot.slane %v378_v11, 1  ;;  %v578_v15 = vrot.slane %v577_v13, 4  ;;  %v776_v16 = vmax.f32 %v770_v8, %v775_v12 }
 0x17f   : > { %v380_v56 = vadd.f32 %v379_v14, %v378_v11  ;;  %v579_v19 = vadd.f32 %v578_v15, %v577_v13  ;;  %v777_v62 = vadd.f32 %v776_v16, %v2536_v55 }
 0x181   : > { %v382_v20 = vmul.f32 0.125, %v380_v56  ;;  %v580_v29 = vrot.slane %v579_v19, 2  ;;  %v778_v30 = vsel %vm373_vm6, %v777_v62, 0.0  ;;  %v969_v31 = vpop.permute.xlu0 %968 }
 0x182   : > { %v779_v32 = vrot.slane %v778_v30, 4  ;;  %v974_v35 = vpop.permute.xlu1 %973  ;;  %v971_v1 = vmax.f32 %v2491_v9, %v969_v31 }
 0x183   : > { %v2549_v36 = vsub.f32 %v372_v58, %v382_v20  ;;  %v581_v2 = vadd.f32 %v580_v29, %v579_v19  ;;  %v976_v37 = vmax.f32 %v2493_v10, %v974_v35 }
 0x184   : > { %v780_v38 = vadd.f32 %v779_v32, %v778_v30 }
 0x185   : > { %v384_v39 = vmul.f32 %v2549_v36, %v2549_v36  ;;  %v582_v21 = vrot.slane %v581_v2, 1  ;;  %v977_v26 = vmax.f32 %v971_v1, %v976_v37 }
 0x186   : > { %v781_v23 = vrot.slane %v780_v38, 2 }
 0x187   : > { %v385_v40 = vsel %vm373_vm6, %v384_v39, 0.0  ;;  %v583_v41 = vadd.f32 %v582_v21, %v581_v2  ;;  %v978_v27 = vadd.f32 %v977_v26, %v2536_v55 }
 0x188   : > { %v386_v42 = vrot.slane %v385_v40, 4  ;;  %v782_v45 = vadd.f32 %v781_v23, %v780_v38 }
 0x189   : > { %v584_v9 = vmul.f32 0.125, %v583_v41  ;;  %v979_v46 = vsel %vm373_vm6, %v978_v27, 0.0  ;;  %v1172_v25 = vpop.permute.xlu0 %1171 }
 0x18a   : > { %v387_v28 = vadd.f32 %v386_v42, %v385_v40  ;;  %v783_v10 = vrot.slane %v782_v45, 1  ;;  %v980_v47 = vrot.slane %v979_v46, 4  ;;  %v1177_v48 = vpop.permute.xlu1 %1176  ;;  %v1174_v51 = vmax.f32 %v2499_v17, %v1172_v25 }
 0x18b   : > { %v2558_v52 = vsub.f32 %v576_v6, %v584_v9  ;;  %v1179_v53 = vmax.f32 %v2501_v18, %v1177_v48 }
 0x18c   : > { %v388_v54 = vrot.slane %v387_v28, 2  ;;  %v784_v0 = vadd.f32 %v783_v10, %v782_v45  ;;  %v981_v57 = vadd.f32 %v980_v47, %v979_v46  ;;  %v403_v46 = vlaneseq }
 0x18d   : > { %v586_v58 = vmul.f32 %v2558_v52, %v2558_v52  ;;  %v1180_v59 = vmax.f32 %v1174_v51, %v1179_v53  ;;  %v2193_v10 = vmov 1966171168  }
 0x18e   : > { %v389_v60 = vadd.f32 %v388_v54, %v387_v28  ;;  %v785_v61 = vmul.f32 0.125, %v784_v0  ;;  %v982_v63 = vrot.slane %v981_v57, 2  ;;  %v401_v47 = vunpack.c.l.s4 %v2193_v10 }
 0x18f   : > { %v587_v49 = vsel %vm373_vm6, %v586_v58, 0.0  ;;  %v2565_v3 = vadd.f32 %v1180_v59, %v2536_v55 }
 0x190   : > { %v390_v17 = vrot.slane %v389_v60, 1  ;;  %v588_v50 = vrot.slane %v587_v49, 4  ;;  %v2567_v4 = vsub.f32 %v777_v62, %v785_v61  ;;  %v983_v18 = vadd.f32 %v982_v63, %v981_v57 }
 0x191   : > { %v1182_v5 = vsel %vm373_vm6, %v2565_v3, 0.0  ;;  %v1375_v6 = vpop.permute.xlu0 %1374 }
 0x192   : > { %v391_v7 = vadd.f32 %v390_v17, %v389_v60  ;;  %v589_v8 = vadd.f32 %v588_v50, %v587_v49  ;;  %v787_v11 = vmul.f32 %v2567_v4, %v2567_v4  ;;  %v984_v12 = vrot.slane %v983_v18, 1  ;;  %v1380_v13 = vpop.permute.xlu1 %1379 }
 0x193   : > { %v1183_v14 = vrot.slane %v1182_v5, 4  ;;  %v1382_v15 = vmax.f32 %v2509_v34, %v1380_v13  ;;  %v1377_v16 = vmax.f32 %v2507_v33, %v1375_v6  ;;  %v402_v17 = vunpack.c.0.s8 %v401_v47 }
 0x194   : > { %v392_v56 = vmul.f32 0.125, %v391_v7  ;;  %v590_v19 = vrot.slane %v589_v8, 2  ;;  %v788_v62 = vsel %vm373_vm6, %v787_v11, 0.0  ;;  %v985_v20 = vadd.f32 %v984_v12, %v983_v18  ;;  %v2599_v12 = vld [vmem:[%s2853_s2 + $0x8] sm:$0xff] }
 0x195   : > { %v789_v29 = vrot.slane %v788_v62, 4  ;;  %v1184_v30 = vadd.f32 %v1183_v14, %v1182_v5  ;;  %v1383_v31 = vmax.f32 %v1377_v16, %v1382_v15 }
 0x196   : > { %v393_v32 = vadd.f32 1e-05, %v392_v56  ;;  %v591_v35 = vadd.f32 %v590_v19, %v589_v8  ;;  %v986_v1 = vmul.f32 0.125, %v985_v20  ;;  %v2608_v20 = vld [vmem:[%s2853_s2 + $0x10] sm:$0xff] }
 0x197   : > { %v790_v2 = vadd.f32 %v789_v29, %v788_v62  ;;  %v1185_v37 = vrot.slane %v1184_v30, 2  ;;  %v2577_v38 = vadd.f32 %v1383_v31, %v2536_v55 }
 0x198   : > { %2150 = vrsqrt.f32 %v393_v32  ;;  %v592_v34 = vrot.slane %v591_v35, 1  ;;  %v2579_v39 = vsub.f32 %v978_v27, %v986_v1 }
 0x199   : > { %v791_v33 = vrot.slane %v790_v2, 2  ;;  %v1186_v21 = vadd.f32 %v1185_v37, %v1184_v30  ;;  %v1385_v26 = vsel %vm373_vm6, %v2577_v38, 0.0  ;;  %v1578_v23 = vpop.permute.xlu0 %1577 }
 0x19a   : > { %v593_v40 = vadd.f32 %v592_v34, %v591_v35  ;;  %v988_v41 = vmul.f32 %v2579_v39, %v2579_v39  ;;  %v1386_v42 = vrot.slane %v1385_v26, 4  ;;  %v1583_v45 = vpop.permute.xlu1 %1582  ;;  %v1580_v9 = vmax.f32 %v2515_v22, %v1578_v23 }
 0x19b   : > { %v792_v25 = vadd.f32 %v791_v33, %v790_v2  ;;  %v1187_v28 = vrot.slane %v1186_v21, 1  ;;  %v1585_v27 = vmax.f32 %v2517_v24, %v1583_v45  ;;  %v404_v24 = vshrl.u32 %v403_v46, 7 }
 0x19c   : > { %v594_v48 = vmul.f32 0.125, %v593_v40  ;;  %v989_v51 = vsel %vm373_vm6, %v988_v41, 0.0  ;;  %v1387_v53 = vadd.f32 %v1386_v42, %v1385_v26 }
 0x19d   : > { %v793_v54 = vrot.slane %v792_v25, 1  ;;  %v990_v0 = vrot.slane %v989_v51, 4  ;;  %v1188_v57 = vadd.f32 %v1187_v28, %v1186_v21  ;;  %v1586_v58 = vmax.f32 %v1580_v9, %v1585_v27 }
 0x19e   : > { %v595_v59 = vadd.f32 1e-05, %v594_v48  ;;  %v1388_v60 = vrot.slane %v1387_v53, 2  ;;  %v2610_v29 = vsub.s32 %v402_v17, %v404_v24 }
 0x19f   : > { %v794_v61 = vadd.f32 %v793_v54, %v792_v25  ;;  %v991_v63 = vadd.f32 %v990_v0, %v989_v51  ;;  %v1189_v22 = vmul.f32 0.125, %v1188_v57  ;;  %v2589_v49 = vadd.f32 %v1586_v58, %v2536_v55 }
 0x1a0   : > { %2152 = vrsqrt.f32 %v595_v59  ;;  %v1389_v50 = vadd.f32 %v1388_v60, %v1387_v53 }
 0x1a1   : > { %v795_v18 = vmul.f32 0.125, %v794_v61  ;;  %v992_v5 = vrot.slane %v991_v63, 2  ;;  %v2592_v6 = vsub.f32 %v2565_v3, %v1189_v22  ;;  %v1588_v7 = vsel %vm373_vm6, %v2589_v49, 0.0  ;;  %v1781_v8 = vpop.permute.xlu0 %1780 }
 0x1a2   : > { %v2151_v11 = vpop.eup %2150  ;;  %v1390_v13 = vrot.slane %v1389_v50, 1  ;;  %v1589_v14 = vrot.slane %v1588_v7, 4  ;;  %v1786_v15 = vpop.permute.xlu1 %1785  ;;  %v1783_v16 = vmax.f32 %v2523_v43, %v1781_v8 }
 0x1a3   : > { %v395_v56 = vmul.f32 %v2151_v11, %v2549_v36  ;;  %v796_v19 = vadd.f32 1e-05, %v795_v18  ;;  %v993_v3 = vadd.f32 %v992_v5, %v991_v63  ;;  %v1191_v62 = vmul.f32 %v2592_v6, %v2592_v6 }
 0x1a4   : > { %v1391_v30 = vadd.f32 %v1390_v13, %v1389_v50  ;;  %v1590_v31 = vadd.f32 %v1589_v14, %v1588_v7  ;;  %v1788_v32 = vmax.f32 %v2525_v44, %v1786_v15 }
 0x1a5   : > { %v396_v43 = vmul.f32 %v2599_v12, %v395_v56  ;;  %2154 = vrsqrt.f32 %v796_v19  ;;  %v994_v36 = vrot.slane %v993_v3, 1  ;;  %v1192_v35 = vsel %vm373_vm6, %v1191_v62, 0.0 }
 0x1a6   : > { %v1193_v1 = vrot.slane %v1192_v35, 4  ;;  %v1392_v2 = vmul.f32 0.125, %v1391_v30  ;;  %v1591_v37 = vrot.slane %v1590_v31, 2  ;;  %v1789_v34 = vmax.f32 %v1783_v16, %v1788_v32 }
 0x1a7   : > { %v397_v33 = vadd.f32 %v2608_v20, %v396_v43  ;;  %v995_v21 = vadd.f32 %v994_v36, %v993_v3 }
 0x1a8   : > { %v1194_v26 = vadd.f32 %v1193_v1, %v1192_v35  ;;  %v2618_v23 = vsub.f32 %v2577_v38, %v1392_v2  ;;  %v1592_v40 = vadd.f32 %v1591_v37, %v1590_v31  ;;  %v2621_v44 = vadd.f32 %v1789_v34, %v2536_v55 }
 0x1a9   : > { %v399_v41 = vcombine.high %v397_v33, %v397_v33  ;;  %v406_v42 = vrot.slane %v397_v33, %v2610_v29  ;;  %v996_v45 = vmul.f32 0.125, %v995_v21 }
 0x1aa   : > { %v2153_v9 = vpop.eup %2152  ;;  %v1195_v46 = vrot.slane %v1194_v26, 2  ;;  %v1394_v38 = vmul.f32 %v2618_v23, %v2618_v23  ;;  %v1593_v25 = vrot.slane %v1592_v40, 1  ;;  %v1791_v55 = vsel %vm373_vm6, %v2621_v44, 0.0 }
 0x1ab   : > { %v413_v28 = vrot.slane %v399_v41, %v2610_v29  ;;  %v414_v27 = vcombine.high %v406_v42, %v406_v42  ;;  %v422_v10 = vrot.slane %v406_v42, %v2610_v29  ;;  %v597_v47 = vmul.f32 %v2153_v9, %v2558_v52 }
 0x1ac   : > { %v997_v48 = vadd.f32 1e-05, %v996_v45  ;;  %v1196_v51 = vadd.f32 %v1195_v46, %v1194_v26  ;;  %v1395_v53 = vsel %vm373_vm6, %v1394_v38, 0.0  ;;  %v1594_v54 = vadd.f32 %v1593_v25, %v1592_v40 }
 0x1ad   : > { %v415_v0 = vcombine.high %v413_v28, %v413_v28  ;;  %v429_v57 = vrot.slane %v413_v28, %v2610_v29  ;;  %v436_v58 = vrot.slane %v414_v27, %v2610_v29  ;;  %v444_v59 = vcombine.high %v422_v10, %v422_v10  ;;  %457 = vst.msk [vmem:[%s2627_s5] sm:$0x1] %vm456_vm7, %v422_v10 }
 0x1ae   : > { %v598_v60 = vmul.f32 %v2599_v12, %v597_v47  ;;  %2156 = vrsqrt.f32 %v997_v48  ;;  %v1197_v52 = vrot.slane %v1196_v51, 1  ;;  %v1396_v61 = vrot.slane %v1395_v53, 4 }
 0x1af   : > { %v2155_v63 = vpop.eup %2154  ;;  %v443_v22 = vrot.slane %v415_v0, %v2610_v29  ;;  %v445_v17 = vcombine.high %v429_v57, %v429_v57  ;;  %v446_v24 = vcombine.high %v436_v58, %v436_v58  ;;  %458 = vst.msk [vmem:[%s2627_s5 + $0x8] sm:$0x1] %vm456_vm7, %v436_v58  ;;  %459 = vst.msk [vmem:[%s2627_s5 + $0x10] sm:$0x1] %vm456_vm7, %v444_v59  ;;  %v1595_v50 = vmul.f32 0.125, %v1594_v54 }
 0x1b0   : > { %461 = vst.msk [vmem:[%s2627_s5 + $0x20] sm:$0x1] %vm456_vm7, %v429_v57  ;;  %v599_v18 = vadd.f32 %v2608_v20, %v598_v60  ;;  %v798_v5 = vmul.f32 %v2155_v63, %v2567_v4  ;;  %v1198_v7 = vadd.f32 %v1197_v52, %v1196_v51  ;;  %v1397_v8 = vadd.f32 %v1396_v61, %v1395_v53 }
 0x1b1   : > { %v447_v11 = vcombine.high %v443_v22, %v443_v22  ;;  %460 = vst.msk [vmem:[%s2627_s5 + $0x18] sm:$0x1] %vm456_vm7, %v446_v24  ;;  %462 = vst.msk [vmem:[%s2627_s5 + $0x28] sm:$0x1] %vm456_vm7, %v443_v22  ;;  %v2658_v13 = vsub.f32 %v2589_v49, %v1595_v50  ;;  %v1792_v14 = vrot.slane %v1791_v55, 4 }
 0x1b2   : > { %463 = vst.msk [vmem:[%s2627_s5 + $0x30] sm:$0x1] %vm456_vm7, %v445_v17  ;;  %v601_v15 = vcombine.high %v599_v18, %v599_v18  ;;  %v608_v16 = vrot.slane %v599_v18, %v2610_v29  ;;  %v799_v56 = vmul.f32 %v2599_v12, %v798_v5  ;;  %v1199_v19 = vmul.f32 0.125, %v1198_v7 }
 0x1b3   : > { %464 = vst.msk [vmem:[%s2627_s5 + $0x38] sm:$0x1] %vm456_vm7, %v447_v11  ;;  %v1398_v4 = vrot.slane %v1397_v8, 2  ;;  %v1597_v3 = vmul.f32 %v2658_v13, %v2658_v13  ;;  %v1793_v62 = vadd.f32 %v1792_v14, %v1791_v55 }
 0x1b4   : > { %v615_v30 = vrot.slane %v601_v15, %v2610_v29  ;;  %v616_v31 = vcombine.high %v608_v16, %v608_v16  ;;  %v624_v49 = vrot.slane %v608_v16, %v2610_v29  ;;  %v800_v32 = vadd.f32 %v2608_v20, %v799_v56 }
 0x1b5   : > { %v1200_v43 = vadd.f32 1e-05, %v1199_v19  ;;  %v1399_v36 = vadd.f32 %v1398_v4, %v1397_v8  ;;  %v1598_v35 = vsel %vm373_vm6, %v1597_v3, 0.0  ;;  %v1794_v1 = vrot.slane %v1793_v62, 2 }
 0x1b6   : > { %v617_v2 = vcombine.high %v615_v30, %v615_v30  ;;  %v631_v37 = vrot.slane %v615_v30, %v2610_v29  ;;  %v638_v34 = vrot.slane %v616_v31, %v2610_v29  ;;  %v646_v33 = vcombine.high %v624_v49, %v624_v49  ;;  %658 = vst.msk [vmem:[%s2627_s5 + $0x1] sm:$0x1] %vm456_vm7, %v624_v49 }
 0x1b7   : > { %v802_v21 = vcombine.high %v800_v32, %v800_v32  ;;  %v809_v26 = vrot.slane %v800_v32, %v2610_v29  ;;  %2158 = vrsqrt.f32 %v1200_v43  ;;  %v1400_v40 = vrot.slane %v1399_v36, 1 }
 0x1b8   : > { %v2157_v41 = vpop.eup %2156  ;;  %v645_v42 = vrot.slane %v617_v2, %v2610_v29  ;;  %v647_v45 = vcombine.high %v631_v37, %v631_v37  ;;  %v648_v9 = vcombine.high %v638_v34, %v638_v34  ;;  %659 = vst.msk [vmem:[%s2627_s5 + $0x9] sm:$0x1] %vm456_vm7, %v638_v34  ;;  %660 = vst.msk [vmem:[%s2627_s5 + $0x11] sm:$0x1] %vm456_vm7, %v646_v33  ;;  %v1599_v46 = vrot.slane %v1598_v35, 4 }
 0x1b9   : > { %662 = vst.msk [vmem:[%s2627_s5 + $0x21] sm:$0x1] %vm456_vm7, %v631_v37  ;;  %v816_v38 = vrot.slane %v802_v21, %v2610_v29  ;;  %v817_v25 = vcombine.high %v809_v26, %v809_v26  ;;  %v825_v55 = vrot.slane %v809_v26, %v2610_v29  ;;  %v999_v28 = vmul.f32 %v2157_v41, %v2579_v39 }
 0x1ba   : > { %v649_v27 = vcombine.high %v645_v42, %v645_v42  ;;  %661 = vst.msk [vmem:[%s2627_s5 + $0x19] sm:$0x1] %vm456_vm7, %v648_v9  ;;  %663 = vst.msk [vmem:[%s2627_s5 + $0x29] sm:$0x1] %vm456_vm7, %v645_v42  ;;  %v1401_v10 = vadd.f32 %v1400_v40, %v1399_v36  ;;  %v1600_v47 = vadd.f32 %v1599_v46, %v1598_v35 }
 0x1bb   : > { %664 = vst.msk [vmem:[%s2627_s5 + $0x31] sm:$0x1] %vm456_vm7, %v647_v45  ;;  %v1795_v48 = vadd.f32 %v1794_v1, %v1793_v62  ;;  %v818_v51 = vcombine.high %v816_v38, %v816_v38  ;;  %v832_v53 = vrot.slane %v816_v38, %v2610_v29  ;;  %v839_v54 = vrot.slane %v817_v25, %v2610_v29 }
 0x1bc   : > { %v847_v0 = vcombine.high %v825_v55, %v825_v55  ;;  %859 = vst.msk [vmem:[%s2627_s5 + $0x2] sm:$0x1] %vm456_vm7, %v825_v55  ;;  %665 = vst.msk [vmem:[%s2627_s5 + $0x39] sm:$0x1] %vm456_vm7, %v649_v27  ;;  %v1000_v39 = vmul.f32 %v2599_v12, %v999_v28  ;;  %v1402_v57 = vmul.f32 0.125, %v1401_v10  ;;  %v1601_v58 = vrot.slane %v1600_v47, 2 }
 0x1bd   : > { %v1796_v59 = vrot.slane %v1795_v48, 1  ;;  %v846_v60 = vrot.slane %v818_v51, %v2610_v29  ;;  %v848_v52 = vcombine.high %v832_v53, %v832_v53  ;;  %v849_v61 = vcombine.high %v839_v54, %v839_v54  ;;  %860 = vst.msk [vmem:[%s2627_s5 + $0xa] sm:$0x1] %vm456_vm7, %v839_v54  ;;  %863 = vst.msk [vmem:[%s2627_s5 + $0x22] sm:$0x1] %vm456_vm7, %v832_v53 }
 0x1be   : > { %861 = vst.msk [vmem:[%s2627_s5 + $0x12] sm:$0x1] %vm456_vm7, %v847_v0  ;;  %v1001_v63 = vadd.f32 %v2608_v20, %v1000_v39  ;;  %v1403_v22 = vadd.f32 1e-05, %v1402_v57  ;;  %v1602_v17 = vadd.f32 %v1601_v58, %v1600_v47 }
 0x1bf   : > { %v1797_v24 = vadd.f32 %v1796_v59, %v1795_v48  ;;  %v850_v50 = vcombine.high %v846_v60, %v846_v60  ;;  %862 = vst.msk [vmem:[%s2627_s5 + $0x1a] sm:$0x1] %vm456_vm7, %v849_v61  ;;  %864 = vst.msk [vmem:[%s2627_s5 + $0x2a] sm:$0x1] %vm456_vm7, %v846_v60 }
 0x1c0   : > { %865 = vst.msk [vmem:[%s2627_s5 + $0x32] sm:$0x1] %vm456_vm7, %v848_v52  ;;  %v1003_v18 = vcombine.high %v1001_v63, %v1001_v63  ;;  %v1010_v5 = vrot.slane %v1001_v63, %v2610_v29  ;;  %2160 = vrsqrt.f32 %v1403_v22  ;;  %v1603_v7 = vrot.slane %v1602_v17, 1 }
 0x1c1   : > { %v2159_v8 = vpop.eup %2158  ;;  %866 = vst.msk [vmem:[%s2627_s5 + $0x3a] sm:$0x1] %vm456_vm7, %v850_v50  ;;  %v1798_v11 = vmul.f32 0.125, %v1797_v24 }
 0x1c2   : > { %v1017_v14 = vrot.slane %v1003_v18, %v2610_v29  ;;  %v1018_v15 = vcombine.high %v1010_v5, %v1010_v5  ;;  %v1026_v16 = vrot.slane %v1010_v5, %v2610_v29  ;;  %v1202_v56 = vmul.f32 %v2159_v8, %v2592_v6 }
 0x1c3   : > { %v1604_v19 = vadd.f32 %v1603_v7, %v1602_v17  ;;  %v2719_v4 = vsub.f32 %v2621_v44, %v1798_v11 }
 0x1c4   : > { %v1019_v3 = vcombine.high %v1017_v14, %v1017_v14  ;;  %v1033_v62 = vrot.slane %v1017_v14, %v2610_v29  ;;  %v1040_v30 = vrot.slane %v1018_v15, %v2610_v29  ;;  %v1048_v31 = vcombine.high %v1026_v16, %v1026_v16  ;;  %1060 = vst.msk [vmem:[%s2627_s5 + $0x3] sm:$0x1] %vm456_vm7, %v1026_v16 }
 0x1c5   : > { %v1203_v49 = vmul.f32 %v2599_v12, %v1202_v56  ;;  %v1605_v32 = vmul.f32 0.125, %v1604_v19  ;;  %v1800_v6 = vmul.f32 %v2719_v4, %v2719_v4 }
 0x1c6   : > { %v1047_v44 = vrot.slane %v1019_v3, %v2610_v29  ;;  %v1049_v43 = vcombine.high %v1033_v62, %v1033_v62  ;;  %v1050_v36 = vcombine.high %v1040_v30, %v1040_v30  ;;  %1061 = vst.msk [vmem:[%s2627_s5 + $0xb] sm:$0x1] %vm456_vm7, %v1040_v30  ;;  %1062 = vst.msk [vmem:[%s2627_s5 + $0x13] sm:$0x1] %vm456_vm7, %v1048_v31 }
 0x1c7   : > { %1064 = vst.msk [vmem:[%s2627_s5 + $0x23] sm:$0x1] %vm456_vm7, %v1033_v62  ;;  %v1204_v35 = vadd.f32 %v2608_v20, %v1203_v49  ;;  %v1606_v1 = vadd.f32 1e-05, %v1605_v32  ;;  %v1801_v2 = vsel %vm373_vm6, %v1800_v6, 0.0 }
 0x1c8   : > { %v1051_v37 = vcombine.high %v1047_v44, %v1047_v44  ;;  %1063 = vst.msk [vmem:[%s2627_s5 + $0x1b] sm:$0x1] %vm456_vm7, %v1050_v36  ;;  %1065 = vst.msk [vmem:[%s2627_s5 + $0x2b] sm:$0x1] %vm456_vm7, %v1047_v44  ;;  %v1802_v34 = vrot.slane %v1801_v2, 4 }
 0x1c9   : > { %1066 = vst.msk [vmem:[%s2627_s5 + $0x33] sm:$0x1] %vm456_vm7, %v1049_v43  ;;  %v1206_v33 = vcombine.high %v1204_v35, %v1204_v35  ;;  %v1213_v21 = vrot.slane %v1204_v35, %v2610_v29  ;;  %2162 = vrsqrt.f32 %v1606_v1 }
 0x1ca   : > { %v2161_v26 = vpop.eup %2160  ;;  %1067 = vst.msk [vmem:[%s2627_s5 + $0x3b] sm:$0x1] %vm456_vm7, %v1051_v37  ;;  %v1803_v40 = vadd.f32 %v1802_v34, %v1801_v2 }
 0x1cb   : > { %v1220_v41 = vrot.slane %v1206_v33, %v2610_v29  ;;  %v1221_v42 = vcombine.high %v1213_v21, %v1213_v21  ;;  %v1229_v45 = vrot.slane %v1213_v21, %v2610_v29  ;;  %v1405_v9 = vmul.f32 %v2161_v26, %v2618_v23 }
 0x1cc   : > { %v1804_v46 = vrot.slane %v1803_v40, 2 }
 0x1cd   : > { %v1222_v38 = vcombine.high %v1220_v41, %v1220_v41  ;;  %v1236_v25 = vrot.slane %v1220_v41, %v2610_v29  ;;  %v1243_v55 = vrot.slane %v1221_v42, %v2610_v29  ;;  %v1251_v28 = vcombine.high %v1229_v45, %v1229_v45  ;;  %1263 = vst.msk [vmem:[%s2627_s5 + $0x4] sm:$0x1] %vm456_vm7, %v1229_v45 }
 0x1ce   : > { %v1406_v27 = vmul.f32 %v2599_v12, %v1405_v9  ;;  %v1805_v10 = vadd.f32 %v1804_v46, %v1803_v40 }
 0x1cf   : > { %v1250_v47 = vrot.slane %v1222_v38, %v2610_v29  ;;  %v1252_v48 = vcombine.high %v1236_v25, %v1236_v25  ;;  %v1253_v23 = vcombine.high %v1243_v55, %v1243_v55  ;;  %1264 = vst.msk [vmem:[%s2627_s5 + $0xc] sm:$0x1] %vm456_vm7, %v1243_v55  ;;  %1265 = vst.msk [vmem:[%s2627_s5 + $0x14] sm:$0x1] %vm456_vm7, %v1251_v28 }
 0x1d0   : > { %1267 = vst.msk [vmem:[%s2627_s5 + $0x24] sm:$0x1] %vm456_vm7, %v1236_v25  ;;  %v1407_v51 = vadd.f32 %v2608_v20, %v1406_v27  ;;  %v1806_v53 = vrot.slane %v1805_v10, 1 }
 0x1d1   : > { %v1254_v54 = vcombine.high %v1250_v47, %v1250_v47  ;;  %1266 = vst.msk [vmem:[%s2627_s5 + $0x1c] sm:$0x1] %vm456_vm7, %v1253_v23  ;;  %1268 = vst.msk [vmem:[%s2627_s5 + $0x2c] sm:$0x1] %vm456_vm7, %v1250_v47 }
 0x1d2   : > { %1269 = vst.msk [vmem:[%s2627_s5 + $0x34] sm:$0x1] %vm456_vm7, %v1252_v48  ;;  %v1409_v0 = vcombine.high %v1407_v51, %v1407_v51  ;;  %v1416_v39 = vrot.slane %v1407_v51, %v2610_v29  ;;  %v1807_v57 = vadd.f32 %v1806_v53, %v1805_v10 }
 0x1d3   : > { %v2163_v58 = vpop.eup %2162  ;;  %1270 = vst.msk [vmem:[%s2627_s5 + $0x3c] sm:$0x1] %vm456_vm7, %v1254_v54 }
 0x1d4   : > { %v1423_v59 = vrot.slane %v1409_v0, %v2610_v29  ;;  %v1424_v60 = vcombine.high %v1416_v39, %v1416_v39  ;;  %v1432_v52 = vrot.slane %v1416_v39, %v2610_v29  ;;  %v1608_v61 = vmul.f32 %v2163_v58, %v2658_v13 }
 0x1d5   : > { %v1808_v63 = vmul.f32 0.125, %v1807_v57 }
 0x1d6   : > { %v1425_v22 = vcombine.high %v1423_v59, %v1423_v59  ;;  %v1439_v17 = vrot.slane %v1423_v59, %v2610_v29  ;;  %v1446_v24 = vrot.slane %v1424_v60, %v2610_v29  ;;  %v1454_v50 = vcombine.high %v1432_v52, %v1432_v52  ;;  %1466 = vst.msk [vmem:[%s2627_s5 + $0x5] sm:$0x1] %vm456_vm7, %v1432_v52 }
 0x1d7   : > { %v1609_v18 = vmul.f32 %v2599_v12, %v1608_v61  ;;  %v1809_v5 = vadd.f32 1e-05, %v1808_v63 }
 0x1d8   : > { %v1453_v7 = vrot.slane %v1425_v22, %v2610_v29  ;;  %v1455_v8 = vcombine.high %v1439_v17, %v1439_v17  ;;  %v1456_v13 = vcombine.high %v1446_v24, %v1446_v24  ;;  %1467 = vst.msk [vmem:[%s2627_s5 + $0xd] sm:$0x1] %vm456_vm7, %v1446_v24  ;;  %1468 = vst.msk [vmem:[%s2627_s5 + $0x15] sm:$0x1] %vm456_vm7, %v1454_v50 }
 0x1d9   : > { %1470 = vst.msk [vmem:[%s2627_s5 + $0x25] sm:$0x1] %vm456_vm7, %v1439_v17  ;;  %v1610_v11 = vadd.f32 %v2608_v20, %v1609_v18  ;;  %2164 = vrsqrt.f32 %v1809_v5 }
 0x1da   : > { %v1457_v14 = vcombine.high %v1453_v7, %v1453_v7  ;;  %1469 = vst.msk [vmem:[%s2627_s5 + $0x1d] sm:$0x1] %vm456_vm7, %v1456_v13  ;;  %1471 = vst.msk [vmem:[%s2627_s5 + $0x2d] sm:$0x1] %vm456_vm7, %v1453_v7 }
 0x1db   : > { %1472 = vst.msk [vmem:[%s2627_s5 + $0x35] sm:$0x1] %vm456_vm7, %v1455_v8  ;;  %v1612_v15 = vcombine.high %v1610_v11, %v1610_v11  ;;  %v1619_v16 = vrot.slane %v1610_v11, %v2610_v29 }
 0x1dc   : > { %1473 = vst.msk [vmem:[%s2627_s5 + $0x3d] sm:$0x1] %vm456_vm7, %v1457_v14 }
 0x1dd   : > { %v1626_v56 = vrot.slane %v1612_v15, %v2610_v29  ;;  %v1627_v19 = vcombine.high %v1619_v16, %v1619_v16  ;;  %v1635_v3 = vrot.slane %v1619_v16, %v2610_v29 }
 0x1df   : > { %v1628_v62 = vcombine.high %v1626_v56, %v1626_v56  ;;  %v1642_v30 = vrot.slane %v1626_v56, %v2610_v29  ;;  %v1649_v31 = vrot.slane %v1627_v19, %v2610_v29  ;;  %v1657_v49 = vcombine.high %v1635_v3, %v1635_v3  ;;  %1669 = vst.msk [vmem:[%s2627_s5 + $0x6] sm:$0x1] %vm456_vm7, %v1635_v3 }
 0x1e1   : > { %v1656_v32 = vrot.slane %v1628_v62, %v2610_v29  ;;  %v1658_v6 = vcombine.high %v1642_v30, %v1642_v30  ;;  %v1659_v44 = vcombine.high %v1649_v31, %v1649_v31  ;;  %1670 = vst.msk [vmem:[%s2627_s5 + $0xe] sm:$0x1] %vm456_vm7, %v1649_v31  ;;  %1671 = vst.msk [vmem:[%s2627_s5 + $0x16] sm:$0x1] %vm456_vm7, %v1657_v49 }
 0x1e2   : > { %1673 = vst.msk [vmem:[%s2627_s5 + $0x26] sm:$0x1] %vm456_vm7, %v1642_v30 }
 0x1e3   : > { %v2165_v43 = vpop.eup %2164  ;;  %v1660_v36 = vcombine.high %v1656_v32, %v1656_v32  ;;  %1672 = vst.msk [vmem:[%s2627_s5 + $0x1e] sm:$0x1] %vm456_vm7, %v1659_v44  ;;  %1674 = vst.msk [vmem:[%s2627_s5 + $0x2e] sm:$0x1] %vm456_vm7, %v1656_v32 }
 0x1e4   : > { %1675 = vst.msk [vmem:[%s2627_s5 + $0x36] sm:$0x1] %vm456_vm7, %v1658_v6  ;;  %v1811_v35 = vmul.f32 %v2165_v43, %v2719_v4 }
 0x1e5   : > { %1676 = vst.msk [vmem:[%s2627_s5 + $0x3e] sm:$0x1] %vm456_vm7, %v1660_v36 }
 0x1e6   : > { %v1812_v1 = vmul.f32 %v2599_v12, %v1811_v35 }
 0x1e8   : > { %v1813_v2 = vadd.f32 %v2608_v20, %v1812_v1 }
 0x1ea   : > { %v1815_v37 = vcombine.high %v1813_v2, %v1813_v2  ;;  %v1822_v34 = vrot.slane %v1813_v2, %v2610_v29 }
 0x1ec   : > { %v1829_v33 = vrot.slane %v1815_v37, %v2610_v29  ;;  %v1830_v21 = vcombine.high %v1822_v34, %v1822_v34  ;;  %v1838_v4 = vrot.slane %v1822_v34, %v2610_v29 }
 0x1ee   : > { %v1831_v26 = vcombine.high %v1829_v33, %v1829_v33  ;;  %v1845_v40 = vrot.slane %v1829_v33, %v2610_v29  ;;  %v1852_v12 = vrot.slane %v1830_v21, %v2610_v29  ;;  %v1860_v41 = vcombine.high %v1838_v4, %v1838_v4  ;;  %1872 = vst.msk [vmem:[%s2627_s5 + $0x7] sm:$0x1] %vm456_vm7, %v1838_v4 }
 0x1f0   : > { %v1859_v20 = vrot.slane %v1831_v26, %v2610_v29  ;;  %v1861_v42 = vcombine.high %v1845_v40, %v1845_v40  ;;  %v1862_v45 = vcombine.high %v1852_v12, %v1852_v12  ;;  %1873 = vst.msk [vmem:[%s2627_s5 + $0xf] sm:$0x1] %vm456_vm7, %v1852_v12  ;;  %1874 = vst.msk [vmem:[%s2627_s5 + $0x17] sm:$0x1] %vm456_vm7, %v1860_v41 }
 0x1f1   : > { %1876 = vst.msk [vmem:[%s2627_s5 + $0x27] sm:$0x1] %vm456_vm7, %v1845_v40 }
 0x1f2   : > { %v1863_v9 = vcombine.high %v1859_v20, %v1859_v20  ;;  %1875 = vst.msk [vmem:[%s2627_s5 + $0x1f] sm:$0x1] %vm456_vm7, %v1862_v45  ;;  %1877 = vst.msk [vmem:[%s2627_s5 + $0x2f] sm:$0x1] %vm456_vm7, %v1859_v20 }
 0x1f3   : > { %1878 = vst.msk [vmem:[%s2627_s5 + $0x37] sm:$0x1] %vm456_vm7, %v1861_v42 }
 0x1f4   : > { %1879 = vst.msk [vmem:[%s2627_s5 + $0x3f] sm:$0x1] %vm456_vm7, %v1863_v9 }
 0x1f5 PF: > { %s13_s14 = sadd.s32 1, %s2188_s14   ;;  %s2855_s12 = smov %s2184_s13 }
 0x1f6   : > { %p10_p5 = scmp.ge.s32.totalorder %s13_s14, 4   ;;  %s2856_s13 = smov %s2858_s15 }
 0x1f8   :  { %12 = sbr.rel (!%p10_p5) target bundleno = 2 (0x2), region = 64 }

</bundles_post_ra>
